<compile_context>
chip_gen: v5e
topology: v5e:2x2
jax: 0.10.0
libtpu: 0.0.40
codegen_flags: <defaults>
</compile_context>

<pallas_src>
import math
from typing import NamedTuple

import jax
import jax.numpy as jnp
from jax import lax
from jax.experimental import pallas as pl
from jax.experimental.pallas import tpu as pltpu

# Model sizes (small, consistent with the forward's shape contract).
L = 8        # sequence length
H = 32       # hidden size (encoder output dim; must be even for box split)
F = 64       # FFN inner dim
VOCAB = 100
LN_EPS = 1e-6


class BoxTensor(NamedTuple):
    z: jnp.ndarray   # min corner, shape (B, C, H // 2)
    Z: jnp.ndarray   # max corner, shape (B, C, H // 2)


def encoder_kernel(x_ref, pos_ref, mask_ref,
                   wq_ref, wk_ref, wv_ref, wo_ref,
                   w1_ref, w2_ref, vec_ref,
                   cls_ref):
    """One encoder layer for nb sequences; only the CLS-row outputs are computed."""
    nb = x_ref.shape[0]
    scale = 1.0 / math.sqrt(H)

    # Packed bias/gain table; every slice starts at lane 0 (no mid-tile slicing).
    bo   = vec_ref[0:1, :H]
    g1   = vec_ref[1:2, :H]
    b1ln = vec_ref[2:3, :H]
    b1   = vec_ref[3:4, :F]
    b2   = vec_ref[4:5, :H]
    g2   = vec_ref[5:6, :H]
    b2ln = vec_ref[6:7, :H]

    # token (bf16 in HBM) + position embeddings; f32 working copy (VPU filler).
    x = x_ref[...].astype(jnp.float32) + pos_ref[...]            # (nb, L, H)
    x2b = x.reshape(nb * L, H).astype(jnp.bfloat16)              # matmul operand
    x_cls = x[:, 0, :]                                           # (nb, H) f32

    # k / v for all tokens; q only for the CLS rows (only row 0 is consumed).
    k = jnp.dot(x2b, wk_ref[...],
                preferred_element_type=jnp.float32).reshape(nb, L, H)
    v = jnp.dot(x2b, wv_ref[...],
                preferred_element_type=jnp.float32).reshape(nb, L, H)
    q = jnp.dot(x_cls.astype(jnp.bfloat16), wq_ref[...],
                preferred_element_type=jnp.float32)              # (nb, H)

    # CLS-query attention scores: VPU mul + lane reduce -> (nb, L).
    scores = jnp.sum(q[:, None, :] * k, axis=-1) * scale
    scores = scores + (mask_ref[...] - 1.0) * 1e9                # 0 real, -1e9 pad
    scores = scores - jnp.max(scores, axis=-1, keepdims=True)
    p = jnp.exp(scores)
    p = p * pl.reciprocal(jnp.sum(p, axis=-1, keepdims=True), approx=True)

    # Weighted sum over the sequence: mul + sublane reduce -> (nb, H).
    attn = jnp.sum(p[:, :, None] * v, axis=1)
    attn = jnp.dot(attn.astype(jnp.bfloat16), wo_ref[...],
                   preferred_element_type=jnp.float32) + bo

    # residual + LayerNorm 1 (one-pass variance, clamped) on CLS rows only.
    h = x_cls + attn
    mu = jnp.mean(h, axis=-1, keepdims=True)
    var = jnp.maximum(jnp.mean(h * h, axis=-1, keepdims=True) - mu * mu, 0.0)
    h = (h - mu) * lax.rsqrt(var + LN_EPS) * g1 + b1ln

    # FFN on CLS rows only.
    ff = jnp.dot(h.astype(jnp.bfloat16), w1_ref[...],
                 preferred_element_type=jnp.float32) + b1
    ff = jax.nn.gelu(ff, approximate=True)
    ff = jnp.dot(ff.astype(jnp.bfloat16), w2_ref[...],
                 preferred_element_type=jnp.float32) + b2

    # residual + LayerNorm 2.
    y = h + ff
    mu2 = jnp.mean(y, axis=-1, keepdims=True)
    var2 = jnp.maximum(jnp.mean(y * y, axis=-1, keepdims=True) - mu2 * mu2, 0.0)
    y = (y - mu2) * lax.rsqrt(var2 + LN_EPS) * g2 + b2ln         # (nb, H)

    cls_ref[...] = y


def _cdiv(a, b):
    return (a + b - 1) // b


def _round_up(a, b):
    return _cdiv(a, b) * b


def _tiling(n):
    """(nb sequences per grid step, padded N).

    nb is sublane-aligned (multiple of 8).  Small/medium N -> a single fat step
    (on 1-TC v5e/v6e extra steps only add ~0.35us/step overhead).  Large N ->
    an even number of steps so both v7x TensorCores get equal work, with nb
    capped at 512 (per-step footprint stays far below v7x's 64 MiB VMEM)."""
    n8 = _round_up(max(n, 1), 8)
    max_nb = 512
    if n8 <= max_nb:
        return n8, n8
    steps = _round_up(_cdiv(n8, max_nb), 2)       # even step count for megacore
    nb = _round_up(_cdiv(n8, steps), 8)
    return nb, nb * steps


def _kernel_weights(p):
    """Pack/cast parameters into the form the kernel consumes."""
    vec = jnp.zeros((8, 128), jnp.float32)
    rows = [("bo", H), ("g1", H), ("b1ln", H), ("b1", F),
            ("b2", H), ("g2", H), ("b2ln", H)]
    for i, (name, width) in enumerate(rows):
        vec = vec.at[i, :width].set(p[name].reshape(-1))
    bf = jnp.bfloat16
    return {
        "pos_emb": p["pos_emb"],
        "wq": p["wq"].astype(bf), "wk": p["wk"].astype(bf),
        "wv": p["wv"].astype(bf), "wo": p["wo"].astype(bf),
        "w1": p["w1"].astype(bf), "w2": p["w2"].astype(bf),
        "vec": vec,
    }


def _encode_cls(x, mask, w):
    """Run the Pallas encoder over N sequences.

    x:    (N, L, H) bf16 gathered token embeddings (no position emb yet)
    mask: (N, L)    f32 0/1 attention mask
    returns CLS vectors (N, H) f32."""
    n = x.shape[0]
    nb, n_pad = _tiling(n)
    if n_pad > n:
        x = jnp.pad(x, ((0, n_pad - n), (0, 0), (0, 0)))
        # padded sequences get an all-ones mask so softmax stays finite;
        # their (cheap, CLS-only) outputs are sliced off below.
        mask = jnp.pad(mask, ((0, n_pad - n), (0, 0)), constant_values=1.0)

    full = lambda i: (0, 0)
    cls = pl.pallas_call(
        encoder_kernel,
        out_shape=jax.ShapeDtypeStruct((n_pad, H), jnp.float32),
        grid_spec=pltpu.PrefetchScalarGridSpec(
            num_scalar_prefetch=0,
            grid=(n_pad // nb,),
            in_specs=[
                pl.BlockSpec((nb, L, H), lambda i: (i, 0, 0)),   # x (bf16)
                pl.BlockSpec((L, H), full),                      # pos_emb (f32)
                pl.BlockSpec((nb, L), lambda i: (i, 0)),         # mask (f32)
                pl.BlockSpec((H, H), full),                      # wq (bf16)
                pl.BlockSpec((H, H), full),                      # wk (bf16)
                pl.BlockSpec((H, H), full),                      # wv (bf16)
                pl.BlockSpec((H, H), full),                      # wo (bf16)
                pl.BlockSpec((H, F), full),                      # w1 (bf16)
                pl.BlockSpec((F, H), full),                      # w2 (bf16)
                pl.BlockSpec((8, 128), full),                    # packed bias/gain
            ],
            out_specs=pl.BlockSpec((nb, H), lambda i: (i, 0)),
        ),
        compiler_params=pltpu.CompilerParams(
            dimension_semantics=("parallel",)),
    )(x, w["pos_emb"], mask,
      w["wq"], w["wk"], w["wv"], w["wo"],
      w["w1"], w["w2"], w["vec"])
    return cls[:n]


def init_params(key):
    ks = jax.random.split(key, 8)
    s = 0.02
    return {
        "tok_emb": jax.random.normal(ks[0], (VOCAB, H), jnp.float32) * s,
        "pos_emb": jax.random.normal(ks[1], (L, H), jnp.float32) * s,
        "wq": jax.random.normal(ks[2], (H, H), jnp.float32) * s,
        "wk": jax.random.normal(ks[3], (H, H), jnp.float32) * s,
        "wv": jax.random.normal(ks[4], (H, H), jnp.float32) * s,
        "wo": jax.random.normal(ks[5], (H, H), jnp.float32) * s,
        "bo": jnp.zeros((1, H), jnp.float32),
        "g1": jnp.ones((1, H), jnp.float32),
        "b1ln": jnp.zeros((1, H), jnp.float32),
        "w1": jax.random.normal(ks[6], (H, F), jnp.float32) * s,
        "b1": jnp.zeros((1, F), jnp.float32),
        "w2": jax.random.normal(ks[7], (F, H), jnp.float32) * s,
        "b2": jnp.zeros((1, H), jnp.float32),
        "g2": jnp.ones((1, H), jnp.float32),
        "b2ln": jnp.zeros((1, H), jnp.float32),
    }


@jax.jit
def entity_box_encoder(entity_candidate_token_ids, entity_candidate_masks, params):
    """Mirrors EntityBoxEncoder.forward."""
    B, C, Lx = entity_candidate_token_ids.shape
    N = B * C
    ids = entity_candidate_token_ids.reshape(N, Lx)
    m = entity_candidate_masks.reshape(N, Lx).astype(jnp.float32)

    # Glue: embedding gather stays in XLA; embedded tokens travel to the kernel
    # as bf16 (halves the dominant HBM stream).  Position add + mask bias happen
    # in-kernel.  (The gather could also be fused in-kernel as a
    # one_hot(ids) @ tok_emb matmul if xprof shows the x DMA on the critical
    # path; kept out here for simplicity.)
    x = jnp.take(params["tok_emb"], ids, axis=0).astype(jnp.bfloat16)  # (N, L, H)

    cls = _encode_cls(x, m, _kernel_weights(params))                   # (N, H)
    box_data = cls.reshape(B, C, H)

    # box_factory.from_vector: split last dim into (z, Z) halves.
    half = H // 2
    return BoxTensor(z=box_data[..., :half], Z=box_data[..., half:])


def _reference_cls(x, mask_bias, p):
    """Pure-JAX f32 reference of the encoder layer (for correctness check)."""
    scale = 1.0 / math.sqrt(H)
    q = x @ p["wq"]
    k = x @ p["wk"]
    v = x @ p["wv"]
    scores = jnp.einsum("nld,nmd->nlm", q, k) * scale + mask_bias
    scores = scores - jnp.max(scores, axis=-1, keepdims=True)
    pr = jnp.exp(scores)
    pr = pr / jnp.sum(pr, axis=-1, keepdims=True)
    attn = jnp.einsum("nlm,nmd->nld", pr, v) @ p["wo"] + p["bo"]
    h = x + attn
    mu = jnp.mean(h, axis=-1, keepdims=True)
    var = jnp.mean((h - mu) ** 2, axis=-1, keepdims=True)
    h = (h - mu) * lax.rsqrt(var + LN_EPS) * p["g1"] + p["b1ln"]
    ff = jax.nn.gelu(h @ p["w1"] + p["b1"], approximate=True) @ p["w2"] + p["b2"]
    y = h + ff
    mu2 = jnp.mean(y, axis=-1, keepdims=True)
    var2 = jnp.mean((y - mu2) ** 2, axis=-1, keepdims=True)
    y = (y - mu2) * lax.rsqrt(var2 + LN_EPS) * p["g2"] + p["b2ln"]
    return y[:, 0, :]


if __name__ == "__main__":
    key = jax.random.PRNGKey(0)
    k_par, k_ids, k_len = jax.random.split(key, 3)

    B, C = 2, 4
    params = init_params(k_par)

    # Deterministic small inputs: (B, C, L) token ids, (B, C, L) 0/1 masks.
    token_ids = jax.random.randint(k_ids, (B, C, L), 0, VOCAB, dtype=jnp.int32)
    token_ids = token_ids.at[:, :, 0].set(1)  # CLS token id
    lengths = jax.random.randint(k_len, (B, C), 2, L + 1, dtype=jnp.int32)
    masks = (jnp.arange(L)[None, None, :] < lengths[:, :, None]).astype(jnp.int32)

    boxes = entity_box_encoder(token_ids, masks, params)
    jax.block_until_ready(boxes)

    # Cross-check the Pallas encoder against a pure-JAX f32 reference.
    N = B * C
    ids_flat = token_ids.reshape(N, L)
    m_flat = masks.reshape(N, L).astype(jnp.float32)
    x_ref = jnp.take(params["tok_emb"], ids_flat, axis=0) + params["pos_emb"][None]
    mb_ref = ((m_flat - 1.0) * 1e9).reshape(N, 1, L)
    cls_ref = _reference_cls(x_ref, mb_ref, params).reshape(B, C, H)
    got = jnp.concatenate([boxes.z, boxes.Z], axis=-1)
    # bf16 matmul operands + EUP approx reciprocal in the kernel vs. the pure-f32
    # reference -> ~1e-3-level drift after the LayerNorms; 2e-2 is comfortable.
    err = float(jnp.max(jnp.abs(got - cls_ref)))
    assert err < 2e-2, f"mismatch vs reference: max abs err {err}"
    assert jnp.all(jnp.isfinite(got))
    assert boxes.z.shape == (B, C, H // 2) and boxes.Z.shape == (B, C, H // 2)

    print("KERNEL_OK")
</pallas_src>

<mosaic_0001>
module attributes {stable_mosaic.version = 11 : i64} {
  func.func @encoder_kernel(%arg0: i32, %arg1: memref<8x8x32xbf16, #tpu.memory_space<vmem>>, %arg2: memref<8x32xf32, #tpu.memory_space<vmem>>, %arg3: memref<8x8xf32, #tpu.memory_space<vmem>>, %arg4: memref<32x32xbf16, #tpu.memory_space<vmem>>, %arg5: memref<32x32xbf16, #tpu.memory_space<vmem>>, %arg6: memref<32x32xbf16, #tpu.memory_space<vmem>>, %arg7: memref<32x32xbf16, #tpu.memory_space<vmem>>, %arg8: memref<32x64xbf16, #tpu.memory_space<vmem>>, %arg9: memref<64x32xbf16, #tpu.memory_space<vmem>>, %arg10: memref<8x128xf32, #tpu.memory_space<vmem>>, %arg11: memref<8x32xf32, #tpu.memory_space<vmem>>) attributes {dimension_semantics = [#tpu.dimension_semantics<parallel>], iteration_bounds = array<i64: 1>, scalar_prefetch = 0 : i64, scratch_operands = 0 : i64, tpu.core_type = #tpu.core_type<tc>, window_params = [{transform_indices = @transform_0, window_bounds = array<i64: 8, 8, 32>}, {pipeline_mode = #tpu.pipeline_mode<synchronous>, transform_indices = @transform_1, window_bounds = array<i64: 8, 32>}, {transform_indices = @transform_2, window_bounds = array<i64: 8, 8>}, {pipeline_mode = #tpu.pipeline_mode<synchronous>, transform_indices = @transform_3, window_bounds = array<i64: 32, 32>}, {pipeline_mode = #tpu.pipeline_mode<synchronous>, transform_indices = @transform_4, window_bounds = array<i64: 32, 32>}, {pipeline_mode = #tpu.pipeline_mode<synchronous>, transform_indices = @transform_5, window_bounds = array<i64: 32, 32>}, {pipeline_mode = #tpu.pipeline_mode<synchronous>, transform_indices = @transform_6, window_bounds = array<i64: 32, 32>}, {pipeline_mode = #tpu.pipeline_mode<synchronous>, transform_indices = @transform_7, window_bounds = array<i64: 32, 64>}, {pipeline_mode = #tpu.pipeline_mode<synchronous>, transform_indices = @transform_8, window_bounds = array<i64: 64, 32>}, {pipeline_mode = #tpu.pipeline_mode<synchronous>, transform_indices = @transform_9, window_bounds = array<i64: 8, 128>}, {transform_indices = @transform_10, window_bounds = array<i64: 8, 32>}]} {
    %c0 = arith.constant 0 : index
    %c0_0 = arith.constant 0 : index
    %0 = vector.load %arg10[%c0, %c0_0] : memref<8x128xf32, #tpu.memory_space<vmem>>, vector<1x32xf32>
    %c1 = arith.constant 1 : index
    %c0_1 = arith.constant 0 : index
    %1 = vector.load %arg10[%c1, %c0_1] : memref<8x128xf32, #tpu.memory_space<vmem>>, vector<1x32xf32>
    %c2 = arith.constant 2 : index
    %c0_2 = arith.constant 0 : index
    %2 = vector.load %arg10[%c2, %c0_2] : memref<8x128xf32, #tpu.memory_space<vmem>>, vector<1x32xf32>
    %c3 = arith.constant 3 : index
    %c0_3 = arith.constant 0 : index
    %3 = vector.load %arg10[%c3, %c0_3] : memref<8x128xf32, #tpu.memory_space<vmem>>, vector<1x64xf32>
    %c4 = arith.constant 4 : index
    %c0_4 = arith.constant 0 : index
    %4 = vector.load %arg10[%c4, %c0_4] : memref<8x128xf32, #tpu.memory_space<vmem>>, vector<1x32xf32>
    %c5 = arith.constant 5 : index
    %c0_5 = arith.constant 0 : index
    %5 = vector.load %arg10[%c5, %c0_5] : memref<8x128xf32, #tpu.memory_space<vmem>>, vector<1x32xf32>
    %c6 = arith.constant 6 : index
    %c0_6 = arith.constant 0 : index
    %6 = vector.load %arg10[%c6, %c0_6] : memref<8x128xf32, #tpu.memory_space<vmem>>, vector<1x32xf32>
    %c0_7 = arith.constant 0 : index
    %c0_8 = arith.constant 0 : index
    %c0_9 = arith.constant 0 : index
    %7 = vector.load %arg1[%c0_7, %c0_8, %c0_9] : memref<8x8x32xbf16, #tpu.memory_space<vmem>>, vector<8x8x32xbf16>
    %8 = arith.extf %7 : vector<8x8x32xbf16> to vector<8x8x32xf32>
    %c0_10 = arith.constant 0 : index
    %c0_11 = arith.constant 0 : index
    %9 = vector.load %arg2[%c0_10, %c0_11] : memref<8x32xf32, #tpu.memory_space<vmem>>, vector<8x32xf32>
    %10 = vector.shape_cast %9 : vector<8x32xf32> to vector<1x8x32xf32>
    %11 = vector.broadcast %10 : vector<1x8x32xf32> to vector<8x8x32xf32>
    %12 = arith.addf %8, %11 : vector<8x8x32xf32>
    %13 = vector.shape_cast %12 : vector<8x8x32xf32> to vector<64x32xf32>
    %14 = arith.truncf %13 : vector<64x32xf32> to vector<64x32xbf16>
    %15 = vector.extract_strided_slice %12 {offsets = [0, 0, 0], sizes = [8, 1, 32], strides = [1, 1, 1]} : vector<8x8x32xf32> to vector<8x1x32xf32>
    %16 = vector.shape_cast %15 : vector<8x1x32xf32> to vector<8x32xf32>
    %c0_12 = arith.constant 0 : index
    %c0_13 = arith.constant 0 : index
    %17 = vector.load %arg5[%c0_12, %c0_13] : memref<32x32xbf16, #tpu.memory_space<vmem>>, vector<32x32xbf16>
    %cst = arith.constant dense<0.000000e+00> : vector<64x32xf32>
    %18 = tpu.matmul %14, %17, %cst {dimension_numbers = #tpu.dot_dimension_numbers<[1], [0], [0], [1], [0, 0, 1, 1], [], []>} : vector<64x32xbf16>, vector<32x32xbf16>, vector<64x32xf32> -> vector<64x32xf32>
    %19 = vector.shape_cast %18 : vector<64x32xf32> to vector<8x8x32xf32>
    %c0_14 = arith.constant 0 : index
    %c0_15 = arith.constant 0 : index
    %20 = vector.load %arg6[%c0_14, %c0_15] : memref<32x32xbf16, #tpu.memory_space<vmem>>, vector<32x32xbf16>
    %cst_16 = arith.constant dense<0.000000e+00> : vector<64x32xf32>
    %21 = tpu.matmul %14, %20, %cst_16 {dimension_numbers = #tpu.dot_dimension_numbers<[1], [0], [0], [1], [0, 0, 1, 1], [], []>} : vector<64x32xbf16>, vector<32x32xbf16>, vector<64x32xf32> -> vector<64x32xf32>
    %22 = vector.shape_cast %21 : vector<64x32xf32> to vector<8x8x32xf32>
    %23 = arith.truncf %16 : vector<8x32xf32> to vector<8x32xbf16>
    %c0_17 = arith.constant 0 : index
    %c0_18 = arith.constant 0 : index
    %24 = vector.load %arg4[%c0_17, %c0_18] : memref<32x32xbf16, #tpu.memory_space<vmem>>, vector<32x32xbf16>
    %cst_19 = arith.constant dense<0.000000e+00> : vector<8x32xf32>
    %25 = tpu.matmul %23, %24, %cst_19 {dimension_numbers = #tpu.dot_dimension_numbers<[1], [0], [0], [1], [0, 0, 1, 1], [], []>} : vector<8x32xbf16>, vector<32x32xbf16>, vector<8x32xf32> -> vector<8x32xf32>
    %26 = vector.shape_cast %25 : vector<8x32xf32> to vector<8x1x32xf32>
    %27 = vector.broadcast %26 : vector<8x1x32xf32> to vector<8x8x32xf32>
    %28 = arith.mulf %27, %19 : vector<8x8x32xf32>
    %cst_20 = arith.constant dense<0.000000e+00> : vector<8x8xf32>
    %29 = vector.multi_reduction <add>, %28, %cst_20 [2] : vector<8x8x32xf32> to vector<8x8xf32>
    %cst_21 = arith.constant 0.176776692 : f32
    %30 = vector.broadcast %cst_21 : f32 to vector<8x8xf32>
    %31 = arith.mulf %29, %30 : vector<8x8xf32>
    %c0_22 = arith.constant 0 : index
    %c0_23 = arith.constant 0 : index
    %32 = vector.load %arg3[%c0_22, %c0_23] : memref<8x8xf32, #tpu.memory_space<vmem>>, vector<8x8xf32>
    %cst_24 = arith.constant 1.000000e+00 : f32
    %33 = vector.broadcast %cst_24 : f32 to vector<8x8xf32>
    %34 = arith.subf %32, %33 : vector<8x8xf32>
    %cst_25 = arith.constant 1.000000e+09 : f32
    %35 = vector.broadcast %cst_25 : f32 to vector<8x8xf32>
    %36 = arith.mulf %34, %35 : vector<8x8xf32>
    %37 = arith.addf %31, %36 : vector<8x8xf32>
    %cst_26 = arith.constant dense<0xFF800000> : vector<8xf32>
    %38 = vector.multi_reduction <maximumf>, %37, %cst_26 [1] : vector<8x8xf32> to vector<8xf32>
    %39 = vector.shape_cast %38 : vector<8xf32> to vector<8x1xf32>
    %40 = vector.broadcast %39 : vector<8x1xf32> to vector<8x8xf32>
    %41 = arith.subf %37, %40 : vector<8x8xf32>
    %42 = math.exp %41 : vector<8x8xf32>
    %cst_27 = arith.constant dense<0.000000e+00> : vector<8xf32>
    %43 = vector.multi_reduction <add>, %42, %cst_27 [1] : vector<8x8xf32> to vector<8xf32>
    %44 = vector.shape_cast %43 : vector<8xf32> to vector<8x1xf32>
    %45 = tpu.reciprocal %44 {approx = true} : vector<8x1xf32> -> vector<8x1xf32>
    %46 = vector.broadcast %45 : vector<8x1xf32> to vector<8x8xf32>
    %47 = arith.mulf %42, %46 : vector<8x8xf32>
    %48 = vector.shape_cast %47 : vector<8x8xf32> to vector<8x8x1xf32>
    %49 = vector.broadcast %48 : vector<8x8x1xf32> to vector<8x8x32xf32>
    %50 = arith.mulf %49, %22 : vector<8x8x32xf32>
    %cst_28 = arith.constant dense<0.000000e+00> : vector<8x32xf32>
    %51 = vector.multi_reduction <add>, %50, %cst_28 [1] : vector<8x8x32xf32> to vector<8x32xf32>
    %52 = arith.truncf %51 : vector<8x32xf32> to vector<8x32xbf16>
    %c0_29 = arith.constant 0 : index
    %c0_30 = arith.constant 0 : index
    %53 = vector.load %arg7[%c0_29, %c0_30] : memref<32x32xbf16, #tpu.memory_space<vmem>>, vector<32x32xbf16>
    %cst_31 = arith.constant dense<0.000000e+00> : vector<8x32xf32>
    %54 = tpu.matmul %52, %53, %cst_31 {dimension_numbers = #tpu.dot_dimension_numbers<[1], [0], [0], [1], [0, 0, 1, 1], [], []>} : vector<8x32xbf16>, vector<32x32xbf16>, vector<8x32xf32> -> vector<8x32xf32>
    %55 = vector.broadcast %0 : vector<1x32xf32> to vector<8x32xf32>
    %56 = arith.addf %54, %55 : vector<8x32xf32>
    %57 = arith.addf %16, %56 : vector<8x32xf32>
    %cst_32 = arith.constant dense<0.000000e+00> : vector<8xf32>
    %58 = vector.multi_reduction <add>, %57, %cst_32 [1] : vector<8x32xf32> to vector<8xf32>
    %59 = vector.shape_cast %58 : vector<8xf32> to vector<8x1xf32>
    %cst_33 = arith.constant 3.200000e+01 : f32
    %60 = vector.broadcast %cst_33 : f32 to vector<8x1xf32>
    %61 = arith.divf %59, %60 : vector<8x1xf32>
    %62 = arith.mulf %57, %57 : vector<8x32xf32>
    %cst_34 = arith.constant dense<0.000000e+00> : vector<8xf32>
    %63 = vector.multi_reduction <add>, %62, %cst_34 [1] : vector<8x32xf32> to vector<8xf32>
    %64 = vector.shape_cast %63 : vector<8xf32> to vector<8x1xf32>
    %cst_35 = arith.constant 3.200000e+01 : f32
    %65 = vector.broadcast %cst_35 : f32 to vector<8x1xf32>
    %66 = arith.divf %64, %65 : vector<8x1xf32>
    %67 = arith.mulf %61, %61 : vector<8x1xf32>
    %68 = arith.subf %66, %67 : vector<8x1xf32>
    %cst_36 = arith.constant 0.000000e+00 : f32
    %69 = vector.broadcast %cst_36 : f32 to vector<8x1xf32>
    %70 = arith.maximumf %68, %69 : vector<8x1xf32>
    %71 = vector.broadcast %61 : vector<8x1xf32> to vector<8x32xf32>
    %72 = arith.subf %57, %71 : vector<8x32xf32>
    %cst_37 = arith.constant 9.99999997E-7 : f32
    %73 = vector.broadcast %cst_37 : f32 to vector<8x1xf32>
    %74 = arith.addf %70, %73 : vector<8x1xf32>
    %75 = math.rsqrt %74 : vector<8x1xf32>
    %76 = vector.broadcast %75 : vector<8x1xf32> to vector<8x32xf32>
    %77 = arith.mulf %72, %76 : vector<8x32xf32>
    %78 = vector.broadcast %1 : vector<1x32xf32> to vector<8x32xf32>
    %79 = arith.mulf %77, %78 : vector<8x32xf32>
    %80 = vector.broadcast %2 : vector<1x32xf32> to vector<8x32xf32>
    %81 = arith.addf %79, %80 : vector<8x32xf32>
    %82 = arith.truncf %81 : vector<8x32xf32> to vector<8x32xbf16>
    %c0_38 = arith.constant 0 : index
    %c0_39 = arith.constant 0 : index
    %83 = vector.load %arg8[%c0_38, %c0_39] : memref<32x64xbf16, #tpu.memory_space<vmem>>, vector<32x64xbf16>
    %cst_40 = arith.constant dense<0.000000e+00> : vector<8x64xf32>
    %84 = tpu.matmul %82, %83, %cst_40 {dimension_numbers = #tpu.dot_dimension_numbers<[1], [0], [0], [1], [0, 0, 1, 1], [], []>} : vector<8x32xbf16>, vector<32x64xbf16>, vector<8x64xf32> -> vector<8x64xf32>
    %85 = vector.broadcast %3 : vector<1x64xf32> to vector<8x64xf32>
    %86 = arith.addf %84, %85 : vector<8x64xf32>
    %87 = arith.mulf %86, %86 : vector<8x64xf32>
    %88 = arith.mulf %86, %87 : vector<8x64xf32>
    %cst_41 = arith.constant 4.471500e-02 : f32
    %89 = vector.broadcast %cst_41 : f32 to vector<8x64xf32>
    %90 = arith.mulf %89, %88 : vector<8x64xf32>
    %91 = arith.addf %86, %90 : vector<8x64xf32>
    %cst_42 = arith.constant 0.797884583 : f32
    %92 = vector.broadcast %cst_42 : f32 to vector<8x64xf32>
    %93 = arith.mulf %92, %91 : vector<8x64xf32>
    %94 = math.tanh %93 : vector<8x64xf32>
    %cst_43 = arith.constant 1.000000e+00 : f32
    %95 = vector.broadcast %cst_43 : f32 to vector<8x64xf32>
    %96 = arith.addf %95, %94 : vector<8x64xf32>
    %cst_44 = arith.constant 5.000000e-01 : f32
    %97 = vector.broadcast %cst_44 : f32 to vector<8x64xf32>
    %98 = arith.mulf %97, %96 : vector<8x64xf32>
    %99 = arith.mulf %86, %98 : vector<8x64xf32>
    %100 = arith.truncf %99 : vector<8x64xf32> to vector<8x64xbf16>
    %c0_45 = arith.constant 0 : index
    %c0_46 = arith.constant 0 : index
    %101 = vector.load %arg9[%c0_45, %c0_46] : memref<64x32xbf16, #tpu.memory_space<vmem>>, vector<64x32xbf16>
    %cst_47 = arith.constant dense<0.000000e+00> : vector<8x32xf32>
    %102 = tpu.matmul %100, %101, %cst_47 {dimension_numbers = #tpu.dot_dimension_numbers<[1], [0], [0], [1], [0, 0, 1, 1], [], []>} : vector<8x64xbf16>, vector<64x32xbf16>, vector<8x32xf32> -> vector<8x32xf32>
    %103 = vector.broadcast %4 : vector<1x32xf32> to vector<8x32xf32>
    %104 = arith.addf %102, %103 : vector<8x32xf32>
    %105 = arith.addf %81, %104 : vector<8x32xf32>
    %cst_48 = arith.constant dense<0.000000e+00> : vector<8xf32>
    %106 = vector.multi_reduction <add>, %105, %cst_48 [1] : vector<8x32xf32> to vector<8xf32>
    %107 = vector.shape_cast %106 : vector<8xf32> to vector<8x1xf32>
    %cst_49 = arith.constant 3.200000e+01 : f32
    %108 = vector.broadcast %cst_49 : f32 to vector<8x1xf32>
    %109 = arith.divf %107, %108 : vector<8x1xf32>
    %110 = arith.mulf %105, %105 : vector<8x32xf32>
    %cst_50 = arith.constant dense<0.000000e+00> : vector<8xf32>
    %111 = vector.multi_reduction <add>, %110, %cst_50 [1] : vector<8x32xf32> to vector<8xf32>
    %112 = vector.shape_cast %111 : vector<8xf32> to vector<8x1xf32>
    %cst_51 = arith.constant 3.200000e+01 : f32
    %113 = vector.broadcast %cst_51 : f32 to vector<8x1xf32>
    %114 = arith.divf %112, %113 : vector<8x1xf32>
    %115 = arith.mulf %109, %109 : vector<8x1xf32>
    %116 = arith.subf %114, %115 : vector<8x1xf32>
    %cst_52 = arith.constant 0.000000e+00 : f32
    %117 = vector.broadcast %cst_52 : f32 to vector<8x1xf32>
    %118 = arith.maximumf %116, %117 : vector<8x1xf32>
    %119 = vector.broadcast %109 : vector<8x1xf32> to vector<8x32xf32>
    %120 = arith.subf %105, %119 : vector<8x32xf32>
    %cst_53 = arith.constant 9.99999997E-7 : f32
    %121 = vector.broadcast %cst_53 : f32 to vector<8x1xf32>
    %122 = arith.addf %118, %121 : vector<8x1xf32>
    %123 = math.rsqrt %122 : vector<8x1xf32>
    %124 = vector.broadcast %123 : vector<8x1xf32> to vector<8x32xf32>
    %125 = arith.mulf %120, %124 : vector<8x32xf32>
    %126 = vector.broadcast %5 : vector<1x32xf32> to vector<8x32xf32>
    %127 = arith.mulf %125, %126 : vector<8x32xf32>
    %128 = vector.broadcast %6 : vector<1x32xf32> to vector<8x32xf32>
    %129 = arith.addf %127, %128 : vector<8x32xf32>
    %c0_54 = arith.constant 0 : index
    %c0_55 = arith.constant 0 : index
    %130 = vector.load %arg11[%c0_54, %c0_55] : memref<8x32xf32, #tpu.memory_space<vmem>>, vector<8x32xf32>
    tpu.vector_store %arg11[%c0_54, %c0_55], %129 {strides = array<i32>} : memref<8x32xf32, #tpu.memory_space<vmem>>, vector<8x32xf32>,
    return
  }
  func.func @transform_0(%arg0: i32) -> (i32, i32, i32) {
    %c0_i32 = arith.constant 0 : i32
    %c0_i32_0 = arith.constant 0 : i32
    %c0_i32_1 = arith.constant 0 : i32
    return %arg0, %c0_i32, %c0_i32_0 : i32, i32, i32
  }
  func.func @transform_1(%arg0: i32) -> (i32, i32) {
    %c0_i32 = arith.constant 0 : i32
    %c0_i32_0 = arith.constant 0 : i32
    %c0_i32_1 = arith.constant 0 : i32
    return %c0_i32, %c0_i32_0 : i32, i32
  }
  func.func @transform_2(%arg0: i32) -> (i32, i32) {
    %c0_i32 = arith.constant 0 : i32
    %c0_i32_0 = arith.constant 0 : i32
    return %arg0, %c0_i32 : i32, i32
  }
  func.func @transform_3(%arg0: i32) -> (i32, i32) {
    %c0_i32 = arith.constant 0 : i32
    %c0_i32_0 = arith.constant 0 : i32
    %c0_i32_1 = arith.constant 0 : i32
    return %c0_i32, %c0_i32_0 : i32, i32
  }
  func.func @transform_4(%arg0: i32) -> (i32, i32) {
    %c0_i32 = arith.constant 0 : i32
    %c0_i32_0 = arith.constant 0 : i32
    %c0_i32_1 = arith.constant 0 : i32
    return %c0_i32, %c0_i32_0 : i32, i32
  }
  func.func @transform_5(%arg0: i32) -> (i32, i32) {
    %c0_i32 = arith.constant 0 : i32
    %c0_i32_0 = arith.constant 0 : i32
    %c0_i32_1 = arith.constant 0 : i32
    return %c0_i32, %c0_i32_0 : i32, i32
  }
  func.func @transform_6(%arg0: i32) -> (i32, i32) {
    %c0_i32 = arith.constant 0 : i32
    %c0_i32_0 = arith.constant 0 : i32
    %c0_i32_1 = arith.constant 0 : i32
    return %c0_i32, %c0_i32_0 : i32, i32
  }
  func.func @transform_7(%arg0: i32) -> (i32, i32) {
    %c0_i32 = arith.constant 0 : i32
    %c0_i32_0 = arith.constant 0 : i32
    %c0_i32_1 = arith.constant 0 : i32
    return %c0_i32, %c0_i32_0 : i32, i32
  }
  func.func @transform_8(%arg0: i32) -> (i32, i32) {
    %c0_i32 = arith.constant 0 : i32
    %c0_i32_0 = arith.constant 0 : i32
    %c0_i32_1 = arith.constant 0 : i32
    return %c0_i32, %c0_i32_0 : i32, i32
  }
  func.func @transform_9(%arg0: i32) -> (i32, i32) {
    %c0_i32 = arith.constant 0 : i32
    %c0_i32_0 = arith.constant 0 : i32
    %c0_i32_1 = arith.constant 0 : i32
    return %c0_i32, %c0_i32_0 : i32, i32
  }
  func.func @transform_10(%arg0: i32) -> (i32, i32) {
    %c0_i32 = arith.constant 0 : i32
    %c0_i32_0 = arith.constant 0 : i32
    return %arg0, %c0_i32 : i32, i32
  }
}

</mosaic_0001>

<bundles_post_ra>
// kernel: entity_box_encoder.1
= control target key start
LH: loop header
LB: loop body
LE: loop exit
PB: predicated region body
PF: predicated region fallthrough
CT: control target
= control target key end

     0   :  { %vm88_vm0 = vcmask 261120   ;;  %vm204_vm1 = vcmask 1041409   ;;  %vm207_vm2 = vcmask 1042434   ;;  %vm210_vm3 = vcmask 1043459   ;;  %s1883_s4 = inlined_call_operand.vmem [shape: bf16[32,32], index: 4, kind: input, shape index: {}]   ;;  %s1884_s0 = inlined_call_operand.vmem [shape: bf16[8,8,32], index: 0, kind: input, shape index: {}]   ;;  %s1885_s1 = inlined_call_operand.vmem [shape: f32[8,32], index: 1, kind: input, shape index: {}]   ;;  %s1886_s3 = inlined_call_operand.vmem [shape: bf16[32,32], index: 3, kind: input, shape index: {}]   ;;  %s1887_s2 = inlined_call_operand.vmem [shape: f32[8,8], index: 2, kind: input, shape index: {}]   ;;  %s1888_s5 = inlined_call_operand.vmem [shape: bf16[32,32], index: 5, kind: input, shape index: {}]   ;;  %s1889_s9 = inlined_call_operand.vmem [shape: f32[8,128], index: 9, kind: input, shape index: {}]   ;;  %s1890_s6 = inlined_call_operand.vmem [shape: bf16[32,32], index: 6, kind: input, shape index: {}]   ;;  %s1891_s7 = inlined_call_operand.vmem [shape: bf16[32,64], index: 7, kind: input, shape index: {}]   ;;  %s1892_s8 = inlined_call_operand.vmem [shape: bf16[64,32], index: 8, kind: input, shape index: {}]   ;;  %s1893_s10 = inlined_call_operand.vmem [shape: f32[8,32], index: 10, kind: output, shape index: {}]  }
   0x1   :  { %v1303_v0 = vld [vmem:[%s1883_s4 + $0x8] sm:$0xff]  ;;  %v1317_v1 = vld [vmem:[%s1884_s0] sm:$0xff]   ;;  %v1333_v4 = vld [vmem:[%s1884_s0 + $0x10] sm:$0xff]   ;;  %v322_v48 = vlaneseq  ;;  %vm213_vm4 = vcmask 1044484   ;;  %vm216_vm5 = vcmask 1045509   ;;  %vm219_vm6 = vcmask 1046534  }
   0x2   :  { %v1318_v2 = vunpack.c.l.bf16 %v1317_v1  ;;  %v1319_v3 = vunpack.c.h.bf16 %v1317_v1  ;;  %v59_v5 = vld [vmem:[%s1885_s1] sm:$0xff]  ;;  %v1334_v6 = vld [vmem:[%s1884_s0 + $0x18] sm:$0xff]   ;;  %107 = vmatpush.bf16.msra.mxu0 %v1303_v0  ;;  %1335 = vmatpush.bf16.msra.mxu2 %v1303_v0  ;;  %v1326_v8 = vunpack.c.l.bf16 %v1333_v4  ;;  %v1327_v9 = vunpack.c.h.bf16 %v1333_v4  ;;  %v1332_v12 = vld [vmem:[%s1884_s0 + $0x8] sm:$0xff]  }
   0x3   :  { %v1302_v7 = vld [vmem:[%s1883_s4] sm:$0xff]  ;;  %v1330_v10 = vunpack.c.l.bf16 %v1334_v6  ;;  %v1331_v11 = vunpack.c.h.bf16 %v1334_v6  ;;  %v1307_v15 = vld [vmem:[%s1886_s3 + $0x8] sm:$0xff]  ;;  %v1322_v16 = vunpack.c.l.bf16 %v1332_v12  ;;  %v1323_v17 = vunpack.c.h.bf16 %v1332_v12 }
   0x4   :  { %v1458_v13 = vadd.f32 %v1318_v2, %v59_v5  ;;  %v1460_v14 = vadd.f32 %v1319_v3, %v59_v5  ;;  %v1465_v18 = vadd.f32 %v1326_v8, %v59_v5  ;;  %v1471_v21 = vadd.f32 %v1327_v9, %v59_v5  ;;  %v1306_v31 = vld [vmem:[%s1886_s3] sm:$0xff] }
   0x5   :  { %v1467_v19 = vadd.f32 %v1330_v10, %v59_v5  ;;  %v1469_v20 = vadd.f32 %v1331_v11, %v59_v5  ;;  %v1481_v25 = vadd.f32 %v1322_v16, %v59_v5  ;;  %v1494_v32 = vadd.f32 %v1323_v17, %v59_v5  ;;  %v317_v39 = vld [vmem:[%s1887_s2] sm:$0xff] }
   0x6   :  { %v1475_v22 = vpack.c.bf16 %v1460_v14, %v1458_v13  ;;  %v175_v23 = vpack.c.bf16 %v1458_v13, %v1458_v13  ;;  %v176_v24 = vpack.c.bf16 %v1460_v14, %v1460_v14  ;;  %108 = vmatpush.bf16.msra.mxu0 %v1302_v7  ;;  %1336 = vmatpush.bf16.msra.mxu2 %v1302_v7  ;;  %v1266_v49 = vadd.f32 -1.0, %v317_v39 }
   0x7   :  { %v1485_v26 = vpack.c.bf16 %v1469_v20, %v1467_v19  ;;  %v181_v27 = vpack.c.bf16 %v1467_v19, %v1467_v19  ;;  %v182_v28 = vpack.c.bf16 %v1469_v20, %v1469_v20  ;;  %v177_v33 = vpack.c.bf16 %v1481_v25, %v1481_v25 }
   0x8   :  { %v195_v29 = vunpack.c.l.b16 %v175_v23  ;;  %v196_v30 = vunpack.c.l.b16 %v176_v24  ;;  %v179_v34 = vpack.c.bf16 %v1465_v18, %v1465_v18  ;;  %v180_v35 = vpack.c.bf16 %v1471_v21, %v1471_v21 }
   0x9   :  { %1241 = vmatmul.msk.bf16.vlgmr.msra.gmra.mxu0 %vm88_vm0, %v1475_v22  ;;  %1244 = vmatmul.msk.bf16.vlgmr.msra.gmra.mxu2 %vm88_vm0, %v1485_v26  ;;  %v178_v37 = vpack.c.bf16 %v1494_v32, %v1494_v32  ;;  %v197_v38 = vunpack.c.l.b16 %v177_v33  ;;  %v201_v40 = vunpack.c.l.b16 %v181_v27  ;;  %v202_v46 = vunpack.c.l.b16 %v182_v28 }
   0xa   :  { %246 = vmatpush.bf16.msrb.mxu2 %v1307_v15  ;;  %v203_v36 = vrot.slane %v196_v30, 7  ;;  %v199_v41 = vunpack.c.l.b16 %v179_v34  ;;  %v200_v42 = vunpack.c.l.b16 %v180_v35  ;;  %v323_v54 = vshrl.u32 %v322_v48, 7 }
   0xb   :  { %v198_v44 = vunpack.c.l.b16 %v178_v37  ;;  %v206_v45 = vrot.slane %v197_v38, 6  ;;  %v218_v53 = vrot.slane %v201_v40, 2  ;;  %v221_v56 = vrot.slane %v202_v46, 1 }
   0xc   :  { %v205_v43 = vsel %vm204_vm1, %v203_v36, %v195_v29  ;;  %v212_v47 = vrot.slane %v199_v41, 4  ;;  %v215_v52 = vrot.slane %v200_v42, 3  ;;  %vm222_vm7 = vcmask 1047559   ;;  %1343 = vset.pattern.permute.xlu1 %v323_v54  ;;  %1341 = vset.pattern.permute.xlu2 %v323_v54 }
   0xd   :  { %v208_v50 = vsel %vm207_vm2, %v206_v45, %v205_v43  ;;  %v209_v51 = vrot.slane %v198_v44, 5  ;;  %v319_v58 = vmul.f32 1e+09, %v1266_v49  ;;  %1342 = vset.pattern.permute.xlu0 %v323_v54  ;;  %v1521_v63 = vpack.c.bf16 %v1494_v32, %v1481_v25 }
   0xe   :  { %247 = vmatpush.bf16.msrb.mxu2 %v1306_v31  ;;  %v1528_v6 = vpack.c.bf16 %v1471_v21, %v1465_v18  ;;  %vm443_vm8 = vcmask 64512   ;;  %vm1022_vm13 = vcmask 523264  }
   0xf   :  { %v211_v55 = vsel %vm210_vm3, %v209_v51, %v208_v50  ;;  %v335_v62 = vperm.slane %v319_v58, 2  ;;  %v321_v1 = vperm.slane %v319_v58, 0  ;;  %v328_v2 = vperm.slane %v319_v58, 1 }
  0x10   :  { %v214_v57 = vsel %vm213_vm4, %v212_v47, %v211_v55  ;;  %v342_v3 = vperm.slane %v319_v58, 3  ;;  %v370_v4 = vperm.slane %v319_v58, 7  ;;  %v349_v5 = vperm.slane %v319_v58, 4 }
  0x11   :  { %v217_v59 = vsel %vm216_vm5, %v215_v52, %v214_v57  ;;  %v356_v7 = vperm.slane %v319_v58, 5  ;;  %v363_v8 = vperm.slane %v319_v58, 6 }
  0x12   :  { %v220_v60 = vsel %vm219_vm6, %v218_v53, %v217_v59 }
  0x13   :  { %v223_v61 = vsel %vm222_vm7, %v221_v56, %v220_v60 }
  0x14   :  { %v224_v0 = vpack.c.b16 %v223_v61, %v223_v61  ;;  %340 = vperm.xlu1 %1343, %v335_v62   ;;  %326 = vperm.xlu2 %1341, %v321_v1  }
  0x15   :  { %333 = vperm.xlu0 %1342, %v328_v2  }
  0x19   :  { %1242 = vmatmul.msk.bf16.gmra.mxu0 %vm88_vm0, %v1521_v63  ;;  %1265 = vmatmul.msk.bf16.vlgmr.msrb.gmra.mxu2 %vm88_vm0, %v224_v0  ;;  %v1380_v0 = vmov 0  }
  0x1c   :  { %347 = vperm.xlu1 %1343, %v342_v3   ;;  %375 = vperm.xlu2 %1341, %v370_v4  }
  0x1d   :  { %1346 = vset.pattern.permute.xlu0 %v1380_v0 }
  0x24   :  { %354 = vperm.xlu1 %1343, %v349_v5   ;;  %1345 = vset.pattern.permute.xlu2 %v1380_v0 }
  0x29   :  { %1243 = vmatmul.msk.bf16.gmra.mxu0 %vm88_vm0, %v1528_v6 }
  0x2c   :  { %361 = vperm.xlu1 %1343, %v356_v7  }
  0x34   :  { %368 = vperm.xlu1 %1343, %v363_v8  }
  0x3c   :  { %1344 = vset.pattern.permute.xlu1 %v1380_v0 }
  0x6e   :  { %v327_v3 = vpop.permute.xlu2 %326 }
  0x76   :  { %v376_v7 = vpop.permute.xlu2 %375 }
  0x86   :  { %v110_v9 = vpop.f32.mrf.mxu0  ;;  %v341_v61 = vpop.permute.xlu1 %340 }
  0x87   :  { %v334_v4 = vpop.permute.xlu0 %333 }
  0x8c   :  { %v125_v10 = vpop.f32.mrf.mxu2 }
  0x8e   :  { %v112_v11 = vpop.f32.mrf.mxu0  ;;  %v348_v62 = vpop.permute.xlu1 %347 }
  0x94   :  { %v127_v12 = vpop.f32.mrf.mxu2 }
  0x96   :  { %v115_v15 = vpop.f32.mrf.mxu0  ;;  %v355_v1 = vpop.permute.xlu1 %354 }
  0x9c   :  { %v249_v16 = vpop.f32.mrf.mxu2 }
  0x9d   :  { %v261_v17 = vperm.slane %v249_v16, 0  ;;  %v259_v23 = vrot.slane %v249_v16, 6  ;;  %v255_v24 = vrot.slane %v249_v16, 2  ;;  %v254_v28 = vrot.slane %v249_v16, 1 }
  0x9e   :  { %v117_v27 = vpop.f32.mrf.mxu0  ;;  %v256_v29 = vrot.slane %v249_v16, 3  ;;  %v257_v34 = vrot.slane %v249_v16, 4  ;;  %v260_v45 = vrot.slane %v249_v16, 7  ;;  %v258_v51 = vrot.slane %v249_v16, 5  ;;  %v362_v2 = vpop.permute.xlu1 %361 }
  0x9f   :  { %v277_v30 = vmul.f32 %v261_v17, %v110_v9  ;;  %v267_v31 = vperm.slane %v259_v23, 0  ;;  %v263_v33 = vperm.slane %v255_v24, 0  ;;  %v262_v38 = vperm.slane %v254_v28, 0 }
  0xa0   :  { %v264_v39 = vperm.slane %v256_v29, 0  ;;  %v265_v43 = vperm.slane %v257_v34, 0  ;;  %v268_v52 = vperm.slane %v260_v45, 0  ;;  %v266_v55 = vperm.slane %v258_v51, 0 }
  0xa1   :  { %v285_v35 = vsel %vm88_vm0, %v277_v30, 0.0  ;;  %v283_v36 = vmul.f32 %v267_v31, %v125_v10  ;;  %v279_v37 = vmul.f32 %v263_v33, %v115_v15  ;;  %v278_v44 = vmul.f32 %v262_v38, %v112_v11 }
  0xa2   :  { %286 = vadd.xlane.f32.xlu0 %v285_v35  ;;  %v280_v47 = vmul.f32 %v264_v39, %v117_v27  ;;  %v284_v56 = vmul.f32 %v268_v52, %v127_v12  ;;  %v1550_v45 = vand.u32 127, %v322_v48 }
  0xa3   :  { %v303_v40 = vsel %vm88_vm0, %v283_v36, 0.0  ;;  %v291_v41 = vsel %vm88_vm0, %v279_v37, 0.0  ;;  %v288_v50 = vsel %vm88_vm0, %v278_v44, 0.0 }
  0xa4   :  { %304 = vadd.xlane.f32.xlu2 %v303_v40  ;;  %v251_v42 = vpop.f32.mrf.mxu2  ;;  %292 = vadd.xlane.f32.xlu1 %v291_v41  ;;  %v294_v53 = vsel %vm88_vm0, %v280_v47, 0.0  ;;  %v306_v59 = vsel %vm88_vm0, %v284_v56, 0.0 }
  0xa6   :  { %v120_v46 = vpop.f32.mrf.mxu0  ;;  %v369_v5 = vpop.permute.xlu1 %368 }
  0xa7   :  { %v281_v49 = vmul.f32 %v265_v43, %v120_v46 }
  0xa9   :  { %v297_v54 = vsel %vm88_vm0, %v281_v49, 0.0 }
  0xaa   :  { %289 = vadd.xlane.f32.xlu0 %v288_v50 }
  0xac   :  { %295 = vadd.xlane.f32.xlu1 %v294_v53  ;;  %298 = vadd.xlane.f32.xlu2 %v297_v54 }
  0xae   :  { %v122_v57 = vpop.f32.mrf.mxu0 }
  0xaf   :  { %v282_v58 = vmul.f32 %v266_v55, %v122_v57 }
  0xb1   :  { %v300_v60 = vsel %vm88_vm0, %v282_v58, 0.0 }
  0xb2   :  { %307 = vadd.xlane.f32.xlu0 %v306_v59 }
  0xb4   :  { %301 = vadd.xlane.f32.xlu1 %v300_v60 }
 0x115   :  { %v287_v8 = vpop.xlane.xlu0 %286 }
 0x116   :  { %v309_v9 = vmul.f32 0.17677669, %v287_v8 }
 0x117   :  { %v305_v10 = vpop.xlane.xlu2 %304  ;;  %v293_v11 = vpop.xlane.xlu1 %292 }
 0x118   :  { %v385_v12 = vadd.f32 %v327_v3, %v309_v9  ;;  %v311_v31 = vmul.f32 0.17677669, %v293_v11  ;;  %v315_v33 = vmul.f32 0.17677669, %v305_v10 }
 0x11a   :  { %402 = vperm.xlu1 %1344, %v385_v12   ;;  %v1543_v34 = vadd.f32 %v341_v61, %v311_v31  ;;  %v1545_v36 = vadd.f32 %v369_v5, %v315_v33 }
 0x11d   :  { %v290_v15 = vpop.xlane.xlu0 %289 }
 0x11e   :  { %v310_v16 = vmul.f32 0.17677669, %v290_v15 }
 0x11f   :  { %v296_v17 = vpop.xlane.xlu1 %295  ;;  %v299_v23 = vpop.xlane.xlu2 %298 }
 0x120   :  { %v386_v24 = vadd.f32 %v334_v4, %v310_v16  ;;  %v312_v27 = vmul.f32 0.17677669, %v296_v17  ;;  %v313_v28 = vmul.f32 0.17677669, %v299_v23 }
 0x122   :  { %v388_v29 = vadd.f32 %v348_v62, %v312_v27  ;;  %v1540_v30 = vadd.f32 %v355_v1, %v313_v28  ;;  %405 = vperm.xlu1 %1344, %v386_v24  }
 0x124   :  { %411 = vperm.xlu2 %1345, %v388_v29   ;;  %414 = vperm.xlu0 %1346, %v1540_v30  }
 0x125   :  { %v308_v39 = vpop.xlane.xlu0 %307 }
 0x126   :  { %v316_v40 = vmul.f32 0.17677669, %v308_v39 }
 0x127   :  { %v302_v35 = vpop.xlane.xlu1 %301 }
 0x128   :  { %v314_v37 = vmul.f32 0.17677669, %v302_v35  ;;  %v392_v41 = vadd.f32 %v376_v7, %v316_v40 }
 0x12a   :  { %408 = vperm.xlu1 %1344, %v1543_v34   ;;  %v390_v38 = vadd.f32 %v362_v2, %v314_v37 }
 0x12c   :  { %420 = vperm.xlu2 %1345, %v1545_v36  }
 0x132   :  { %417 = vperm.xlu1 %1344, %v390_v38  }
 0x13a   :  { %423 = vperm.xlu1 %1344, %v392_v41  }
 0x17e   :  { %v412_v46 = vpop.permute.xlu2 %411 }
 0x17f   :  { %v430_v54 = vperm.slane %v412_v46, %v1550_v45 }
 0x186   :  { %v421_v58 = vpop.permute.xlu2 %420 }
 0x187   :  { %v433_v61 = vperm.slane %v421_v58, %v1550_v45 }
 0x18c   :  { %v403_v42 = vpop.permute.xlu1 %402 }
 0x18d   :  { %v427_v50 = vperm.slane %v403_v42, %v1550_v45 }
 0x194   :  { %v406_v43 = vpop.permute.xlu1 %405 }
 0x195   :  { %v428_v47 = vperm.slane %v406_v43, %v1550_v45 }
 0x196   :  { %v415_v55 = vpop.permute.xlu0 %414 }
 0x197   :  { %v435_v51 = vsel %vm204_vm1, %v428_v47, %v427_v50  ;;  %v431_v57 = vperm.slane %v415_v55, %v1550_v45 }
 0x19c   :  { %v409_v44 = vpop.permute.xlu1 %408 }
 0x19d   :  { %v429_v49 = vperm.slane %v409_v44, %v1550_v45 }
 0x19f   :  { %v436_v52 = vsel %vm207_vm2, %v429_v49, %v435_v51 }
 0x1a0   :  { %v437_v56 = vsel %vm210_vm3, %v430_v54, %v436_v52  ;;  %v1304_v54 = vld [vmem:[%s1888_s5] sm:$0xff] }
 0x1a1   :  { %v438_v59 = vsel %vm213_vm4, %v431_v57, %v437_v56 }
 0x1a4   :  { %v418_v53 = vpop.permute.xlu1 %417 }
 0x1a5   :  { %v432_v48 = vperm.slane %v418_v53, %v1550_v45 }
 0x1a7   :  { %v439_v60 = vsel %vm216_vm5, %v432_v48, %v438_v59 }
 0x1a8   :  { %v440_v1 = vsel %vm219_vm6, %v433_v61, %v439_v60 }
 0x1ac   :  { %v424_v62 = vpop.permute.xlu1 %423 }
 0x1ad   :  { %v434_v0 = vperm.slane %v424_v62, %v1550_v45 }
 0x1af   :  { %v441_v2 = vsel %vm222_vm7, %v434_v0, %v440_v1 }
 0x1b0   :  { %v444_v3 = vsel %vm443_vm8, %v441_v2, -inf }
 0x1b1   :  { %445 = vmax.xlane.f32.xlu2 %v444_v3 }
 0x224   :  { %v446_v4 = vpop.xlane.xlu2 %445 }
 0x225   :  { %v451_v5 = vperm.slane %v446_v4, 3  ;;  %v448_v7 = vperm.slane %v446_v4, 0  ;;  %v453_v10 = vperm.slane %v446_v4, 5  ;;  %v449_v11 = vperm.slane %v446_v4, 1 }
 0x226   :  { %v455_v28 = vperm.slane %v446_v4, 7  ;;  %v450_v33 = vperm.slane %v446_v4, 2 }
 0x227   :  { %v467_v8 = vsub.f32 %v388_v29, %v451_v5  ;;  %v464_v9 = vsub.f32 %v385_v12, %v448_v7  ;;  %v469_v17 = vsub.f32 %v390_v38, %v453_v10  ;;  %v465_v23 = vsub.f32 %v386_v24, %v449_v11 }
 0x228   :  { %v471_v12 = vsub.f32 %v392_v41, %v455_v28  ;;  %v466_v29 = vsub.f32 %v1543_v34, %v450_v33  ;;  %v452_v24 = vperm.slane %v446_v4, 4  ;;  %v454_v41 = vperm.slane %v446_v4, 6 }
 0x229   :  { %v478_v15 = vmul.f32 1.442695, %v467_v8  ;;  %v472_v16 = vmul.f32 1.442695, %v464_v9  ;;  %v482_v27 = vmul.f32 1.442695, %v469_v17 }
 0x22a   :  { %v474_v31 = vmul.f32 1.442695, %v465_v23  ;;  %v486_v38 = vmul.f32 1.442695, %v471_v12  ;;  %v476_v39 = vmul.f32 1.442695, %v466_v29  ;;  %v468_v43 = vsub.f32 %v1540_v30, %v452_v24 }
 0x22b   :  { %1354 = vpow2.f32 %v478_v15  ;;  %v470_v47 = vsub.f32 %v1545_v36, %v454_v41  ;;  %v1305_v30 = vld [vmem:[%s1888_s5 + $0x8] sm:$0xff] }
 0x22c   :  { %1356 = vpow2.f32 %v472_v16  ;;  %v480_v44 = vmul.f32 1.442695, %v468_v43  ;;  %152 = vmatpush.bf16.msra.mxu1 %v1305_v30  ;;  %1337 = vmatpush.bf16.msra.mxu3 %v1305_v30 }
 0x22d   :  { %1358 = vpow2.f32 %v482_v27  ;;  %v484_v49 = vmul.f32 1.442695, %v470_v47 }
 0x22e   :  { %1360 = vpow2.f32 %v474_v31 }
 0x22f   :  { %1362 = vpow2.f32 %v486_v38 }
 0x230   :  { %1364 = vpow2.f32 %v476_v39  ;;  %153 = vmatpush.bf16.msra.mxu1 %v1304_v54  ;;  %1338 = vmatpush.bf16.msra.mxu3 %v1304_v54 }
 0x231   :  { %v1568_v35 = vpop.eup %1354  ;;  %1366 = vpow2.f32 %v480_v44 }
 0x232   :  { %v1570_v37 = vpop.eup %1356  ;;  %506 = vperm.xlu0 %1346, %v1568_v35   ;;  %1368 = vpow2.f32 %v484_v49 }
 0x233   :  { %497 = vperm.xlu1 %1344, %v1570_v37   ;;  %v1575_v40 = vpop.eup %1358  ;;  %1253 = vmatmul.msk.bf16.vlgmr.msra.gmra.mxu1 %vm88_vm0, %v1475_v22 }
 0x234   :  { %v1577_v42 = vpop.eup %1360  ;;  %1256 = vmatmul.msk.bf16.vlgmr.msra.gmra.mxu3 %vm88_vm0, %v1485_v26 }
 0x235   :  { %v1582_v46 = vpop.eup %1362 }
 0x236   :  { %v1365_v34 = vpop.eup %1364 }
 0x237   :  { %v1367_v50 = vpop.eup %1366 }
 0x238   :  { %v1369_v51 = vpop.eup %1368 }
 0x23a   :  { %512 = vperm.xlu0 %1346, %v1575_v40  }
 0x23b   :  { %500 = vperm.xlu1 %1344, %v1577_v42  }
 0x242   :  { %518 = vperm.xlu0 %1346, %v1582_v46  }
 0x243   :  { %503 = vperm.xlu1 %1344, %v1365_v34   ;;  %1254 = vmatmul.msk.bf16.gmra.mxu1 %vm88_vm0, %v1521_v63 }
 0x24b   :  { %509 = vperm.xlu1 %1344, %v1367_v50  }
 0x253   :  { %515 = vperm.xlu1 %1344, %v1369_v51   ;;  %1255 = vmatmul.msk.bf16.gmra.mxu1 %vm88_vm0, %v1528_v6 }
 0x2a4   :  { %v507_v55 = vpop.permute.xlu0 %506 }
 0x2a5   :  { %v498_v52 = vpop.permute.xlu1 %497  ;;  %v523_v22 = vperm.slane %v507_v55, %v1550_v45 }
 0x2a6   :  { %v520_v58 = vperm.slane %v498_v52, %v1550_v45 }
 0x2ac   :  { %v513_v56 = vpop.permute.xlu0 %512 }
 0x2ad   :  { %v501_v53 = vpop.permute.xlu1 %500  ;;  %v525_v2 = vperm.slane %v513_v56, %v1550_v45 }
 0x2ae   :  { %v521_v48 = vperm.slane %v501_v53, %v1550_v45 }
 0x2b0   :  { %v528_v60 = vsel %vm204_vm1, %v521_v48, %v520_v58 }
 0x2b4   :  { %v519_v26 = vpop.permute.xlu0 %518 }
 0x2b5   :  { %v504_v36 = vpop.permute.xlu1 %503  ;;  %v527_v5 = vperm.slane %v519_v26, %v1550_v45 }
 0x2b6   :  { %v522_v57 = vperm.slane %v504_v36, %v1550_v45 }
 0x2b8   :  { %v529_v61 = vsel %vm207_vm2, %v522_v57, %v528_v60 }
 0x2b9   :  { %v530_v0 = vsel %vm210_vm3, %v523_v22, %v529_v61 }
 0x2bd   :  { %v510_v59 = vpop.permute.xlu1 %509 }
 0x2be   :  { %v524_v62 = vperm.slane %v510_v59, %v1550_v45 }
 0x2c0   :  { %v531_v1 = vsel %vm213_vm4, %v524_v62, %v530_v0  ;;  %v1309_v0 = vld [vmem:[%s1890_s6 + $0x8] sm:$0xff] }
 0x2c1   :  { %v532_v7 = vsel %vm216_vm5, %v525_v2, %v531_v1  ;;  %727 = vmatpush.bf16.msrb.mxu3 %v1309_v0 }
 0x2c5   :  { %v516_v3 = vpop.permute.xlu1 %515 }
 0x2c6   :  { %v526_v4 = vperm.slane %v516_v3, %v1550_v45 }
 0x2c8   :  { %v533_v8 = vsel %vm219_vm6, %v526_v4, %v532_v7 }
 0x2c9   :  { %v534_v9 = vsel %vm222_vm7, %v527_v5, %v533_v8  ;;  %v1308_v5 = vld [vmem:[%s1890_s6] sm:$0xff] }
 0x2ca   :  { %v536_v10 = vsel %vm443_vm8, %v534_v9, 0.0  ;;  %v170_v9 = vpop.f32.mrf.mxu3  ;;  %728 = vmatpush.bf16.msrb.mxu3 %v1308_v5 }
 0x2cb   :  { %537 = vadd.xlane.f32.xlu2 %v536_v10 }
 0x33e   :  { %v538_v63 = vpop.xlane.xlu2 %537 }
 0x33f   :  { %1370 = vrcp.f32 %v538_v63 }
 0x345   :  { %v1371_v11 = vpop.eup %1370 }
 0x346   :  { %v543_v15 = vperm.slane %v1371_v11, 2  ;;  %v542_v16 = vperm.slane %v1371_v11, 1  ;;  %v541_v17 = vperm.slane %v1371_v11, 0  ;;  %v545_v28 = vperm.slane %v1371_v11, 4 }
 0x347   :  { %v544_v31 = vperm.slane %v1371_v11, 3  ;;  %v547_v6 = vperm.slane %v1371_v11, 6  ;;  %v546_v29 = vperm.slane %v1371_v11, 5  ;;  %v548_v24 = vperm.slane %v1371_v11, 7 }
 0x348   :  { %v559_v23 = vmul.f32 %v1365_v34, %v543_v15  ;;  %v558_v45 = vmul.f32 %v1577_v42, %v542_v16  ;;  %v557_v27 = vmul.f32 %v1570_v37, %v541_v17  ;;  %v561_v33 = vmul.f32 %v1367_v50, %v545_v28  ;;  %v155_v42 = vpop.f32.mrf.mxu1 }
 0x349   :  { %v560_v12 = vmul.f32 %v1568_v35, %v544_v31  ;;  %v563_v38 = vmul.f32 %v1369_v51, %v547_v6  ;;  %v562_v39 = vmul.f32 %v1575_v40, %v546_v29  ;;  %v564_v37 = vmul.f32 %v1582_v46, %v548_v24 }
 0x34a   :  { %577 = vperm.xlu2 %1345, %v559_v23   ;;  %572 = vperm.xlu0 %1346, %v558_v45  }
 0x34b   :  { %567 = vperm.xlu1 %1344, %v557_v27  }
 0x350   :  { %v157_v43 = vpop.f32.mrf.mxu1 }
 0x352   :  { %587 = vperm.xlu0 %1346, %v561_v33  }
 0x353   :  { %582 = vperm.xlu1 %1344, %v560_v12  }
 0x358   :  { %v160_v44 = vpop.f32.mrf.mxu1 }
 0x35a   :  { %597 = vperm.xlu0 %1346, %v563_v38  }
 0x35b   :  { %592 = vperm.xlu1 %1344, %v562_v39  }
 0x360   :  { %v162_v34 = vpop.f32.mrf.mxu1 }
 0x363   :  { %602 = vperm.xlu1 %1344, %v564_v37  }
 0x368   :  { %v165_v56 = vpop.f32.mrf.mxu1 }
 0x370   :  { %v167_v23 = vpop.f32.mrf.mxu1 }
 0x3a4   :  { %v578_v41 = vpop.permute.xlu2 %577 }
 0x3a5   :  { %v607_v47 = vmul.f32 %v578_v41, %v160_v44 }
 0x3a7   :  { %v627_v51 = vsel %vm88_vm0, %v607_v47, 0.0 }
 0x3a8   :  { %v628_v46 = vrot.slane %v627_v51, 4 }
 0x3aa   :  { %v629_v61 = vadd.f32 %v628_v46, %v627_v51 }
 0x3ac   :  { %v630_v7 = vrot.slane %v629_v61, 2 }
 0x3ae   :  { %v631_v28 = vadd.f32 %v630_v7, %v629_v61 }
 0x3bc   :  { %v573_v35 = vpop.permute.xlu0 %572 }
 0x3bd   :  { %v606_v49 = vmul.f32 %v573_v35, %v157_v43  ;;  %v568_v50 = vpop.permute.xlu1 %567  ;;  %v632_v43 = vrot.slane %v631_v28, 1 }
 0x3be   :  { %v605_v52 = vmul.f32 %v568_v50, %v155_v42 }
 0x3bf   :  { %v620_v40 = vsel %vm88_vm0, %v606_v49, 0.0 }
 0x3c0   :  { %v621_v30 = vrot.slane %v620_v40, 4  ;;  %v613_v53 = vsel %vm88_vm0, %v605_v52, 0.0  ;;  %v172_v52 = vpop.f32.mrf.mxu3 }
 0x3c1   :  { %v614_v54 = vrot.slane %v613_v53, 4 }
 0x3c2   :  { %v622_v55 = vadd.f32 %v621_v30, %v620_v40  ;;  %v633_v30 = vadd.f32 %v632_v43, %v631_v28 }
 0x3c3   :  { %v615_v36 = vadd.f32 %v614_v54, %v613_v53 }
 0x3c4   :  { %v623_v48 = vrot.slane %v622_v55, 2  ;;  %v588_v57 = vpop.permute.xlu0 %587  ;;  %v671_v61 = vpack.c.bf16 %v633_v30, %v633_v30 }
 0x3c5   :  { %v616_v58 = vrot.slane %v615_v36, 2  ;;  %v609_v59 = vmul.f32 %v588_v57, %v165_v56  ;;  %v583_v60 = vpop.permute.xlu1 %582 }
 0x3c6   :  { %v608_v62 = vmul.f32 %v583_v60, %v162_v34  ;;  %v624_v26 = vadd.f32 %v623_v48, %v622_v55  ;;  %v692_v5 = vunpack.c.l.b16 %v671_v61 }
 0x3c7   :  { %v641_v22 = vsel %vm88_vm0, %v609_v59, 0.0  ;;  %v617_v3 = vadd.f32 %v616_v58, %v615_v36 }
 0x3c8   :  { %v642_v1 = vrot.slane %v641_v22, 4  ;;  %v634_v2 = vsel %vm88_vm0, %v608_v62, 0.0  ;;  %v625_v63 = vrot.slane %v624_v26, 1 }
 0x3c9   :  { %v635_v4 = vrot.slane %v634_v2, 4  ;;  %v618_v16 = vrot.slane %v617_v3, 1 }
 0x3ca   :  { %v643_v8 = vadd.f32 %v642_v1, %v641_v22  ;;  %v626_v6 = vadd.f32 %v625_v63, %v624_v26 }
 0x3cb   :  { %v636_v10 = vadd.f32 %v635_v4, %v634_v2  ;;  %v619_v24 = vadd.f32 %v618_v16, %v617_v3 }
 0x3cc   :  { %v644_v11 = vrot.slane %v643_v8, 2  ;;  %v598_v15 = vpop.permute.xlu0 %597  ;;  %v670_v34 = vpack.c.bf16 %v626_v6, %v626_v6  ;;  %v1347_v6 = vld [vmem:[%s1889_s9] ss:$0 sm:$0xff] }
 0x3cd   :  { %v637_v17 = vrot.slane %v636_v10, 2  ;;  %v611_v45 = vmul.f32 %v598_v15, %v170_v9  ;;  %v593_v27 = vpop.permute.xlu1 %592  ;;  %v669_v49 = vpack.c.bf16 %v619_v24, %v619_v24 }
 0x3ce   :  { %v610_v31 = vmul.f32 %v593_v27, %v167_v23  ;;  %v645_v29 = vadd.f32 %v644_v11, %v643_v8  ;;  %v691_v55 = vunpack.c.l.b16 %v670_v34 }
 0x3cf   :  { %v638_v33 = vadd.f32 %v637_v17, %v636_v10  ;;  %v655_v12 = vsel %vm88_vm0, %v611_v45, 0.0  ;;  %v690_v57 = vunpack.c.l.b16 %v669_v49 }
 0x3d0   :  { %v656_v38 = vrot.slane %v655_v12, 4  ;;  %v648_v39 = vsel %vm88_vm0, %v610_v31, 0.0  ;;  %v646_v47 = vrot.slane %v645_v29, 1 }
 0x3d1   :  { %v639_v37 = vrot.slane %v638_v33, 1  ;;  %v649_v42 = vrot.slane %v648_v39, 4  ;;  %v698_v1 = vsel %vm204_vm1, %v691_v55, %v690_v57 }
 0x3d2   :  { %v657_v44 = vadd.f32 %v656_v38, %v655_v12  ;;  %v647_v36 = vadd.f32 %v646_v47, %v645_v29  ;;  %v699_v9 = vsel %vm207_vm2, %v692_v5, %v698_v1 }
 0x3d3   :  { %v650_v41 = vadd.f32 %v649_v42, %v648_v39  ;;  %v640_v50 = vadd.f32 %v639_v37, %v638_v33 }
 0x3d4   :  { %v658_v35 = vrot.slane %v657_v44, 2  ;;  %v673_v0 = vpack.c.bf16 %v647_v36, %v647_v36 }
 0x3d5   :  { %v651_v51 = vrot.slane %v650_v41, 2  ;;  %v603_v40 = vpop.permute.xlu1 %602  ;;  %v672_v58 = vpack.c.bf16 %v640_v50, %v640_v50 }
 0x3d6   :  { %v659_v53 = vadd.f32 %v658_v35, %v657_v44  ;;  %v612_v54 = vmul.f32 %v603_v40, %v172_v52  ;;  %v694_v8 = vunpack.c.l.b16 %v673_v0 }
 0x3d7   :  { %v652_v46 = vadd.f32 %v651_v51, %v650_v41  ;;  %v693_v2 = vunpack.c.l.b16 %v672_v58 }
 0x3d8   :  { %v660_v56 = vrot.slane %v659_v53, 1  ;;  %v662_v48 = vsel %vm88_vm0, %v612_v54, 0.0 }
 0x3d9   :  { %v653_v59 = vrot.slane %v652_v46, 1  ;;  %v663_v60 = vrot.slane %v662_v48, 4  ;;  %v700_v63 = vsel %vm210_vm3, %v693_v2, %v699_v9 }
 0x3da   :  { %v661_v26 = vadd.f32 %v660_v56, %v659_v53  ;;  %v701_v23 = vsel %vm213_vm4, %v694_v8, %v700_v63 }
 0x3db   :  { %v654_v62 = vadd.f32 %v653_v59, %v652_v46  ;;  %v664_v22 = vadd.f32 %v663_v60, %v662_v48 }
 0x3dc   :  { %v675_v10 = vpack.c.bf16 %v661_v26, %v661_v26 }
 0x3dd   :  { %v674_v3 = vpack.c.bf16 %v654_v62, %v654_v62  ;;  %v665_v4 = vrot.slane %v664_v22, 2 }
 0x3de   :  { %v696_v17 = vunpack.c.l.b16 %v675_v10 }
 0x3df   :  { %v666_v7 = vadd.f32 %v665_v4, %v664_v22  ;;  %v695_v11 = vunpack.c.l.b16 %v674_v3 }
 0x3e1   :  { %v667_v15 = vrot.slane %v666_v7, 1  ;;  %v702_v27 = vsel %vm216_vm5, %v695_v11, %v701_v23  ;;  %v1381_v23 = vmov 32.0  }
 0x3e2   :  { %v703_v31 = vsel %vm219_vm6, %v696_v17, %v702_v27  ;;  %1372 = vrcp.f32 %v1381_v23 }
 0x3e3   :  { %v668_v16 = vadd.f32 %v667_v15, %v666_v7 }
 0x3e5   :  { %v676_v45 = vpack.c.bf16 %v668_v16, %v668_v16 }
 0x3e7   :  { %v697_v28 = vunpack.c.l.b16 %v676_v45 }
 0x3e8   :  { %v1373_v45 = vpop.eup %1372 }
 0x3e9   :  { %v704_v33 = vsel %vm222_vm7, %v697_v28, %v703_v31  ;;  %v785_v27 = vmul.f32 32.0, %v1373_v45  ;;  %vm789_vm9 = vweird.f32 %v1373_v45 }
 0x3ea   :  { %v705_v12 = vpack.c.b16 %v704_v33, %v704_v33 }
 0x3eb   :  { %v786_v28 = vsub.f32 1.0, %v785_v27 }
 0x3ec   :  { %1275 = vmatmul.msk.bf16.vlgmr.msrb.gmra.mxu3 %vm88_vm0, %v705_v12 }
 0x3ed   :  { %v787_v31 = vmul.f32 %v1373_v45, %v786_v28 }
 0x3ef   :  { %v788_v33 = vadd.f32 %v1373_v45, %v787_v31 }
 0x3f1   :  { %v1710_v12 = vsel %vm789_vm9, %v1373_v45, %v788_v33 }
 0x46f   :  { %v730_v29 = vpop.f32.mrf.mxu3 }
 0x470   :  { %v731_v38 = vadd.f32 %v1347_v6, %v730_v29 }
 0x472   :  { %v735_v39 = vrot.slane %v731_v38, 1  ;;  %v736_v24 = vrot.slane %v731_v38, 2  ;;  %v737_v37 = vrot.slane %v731_v38, 3  ;;  %v738_v42 = vrot.slane %v731_v38, 4 }
 0x473   :  { %v739_v43 = vrot.slane %v731_v38, 5  ;;  %v740_v44 = vrot.slane %v731_v38, 6  ;;  %v741_v41 = vrot.slane %v731_v38, 7  ;;  %v1647_v34 = vadd.f32 %v731_v38, %v1458_v13 }
 0x474   :  { %v1650_v47 = vadd.f32 %v735_v39, %v1460_v14  ;;  %v1653_v35 = vadd.f32 %v736_v24, %v1481_v25  ;;  %v1656_v49 = vadd.f32 %v737_v37, %v1494_v32  ;;  %v1659_v50 = vadd.f32 %v738_v42, %v1465_v18  ;;  %v1311_v24 = vld [vmem:[%s1891_s7 + $0x8] sm:$0xff]  ;;  %v1310_v42 = vld [vmem:[%s1891_s7] sm:$0xff] }
 0x475   :  { %v1662_v52 = vadd.f32 %v739_v43, %v1471_v21  ;;  %v1667_v14 = vadd.f32 %v740_v44, %v1467_v19  ;;  %v1670_v25 = vadd.f32 %v741_v41, %v1469_v20  ;;  %v792_v32 = vmul.f32 %v1647_v34, %v1647_v34  ;;  %972 = vmatpush.bf16.msra.mxu2 %v1311_v24 }
 0x476   :  { %v766_v51 = vrot.slane %v1650_v47, 7  ;;  %v768_v13 = vrot.slane %v1653_v35, 6  ;;  %v793_v18 = vmul.f32 %v1650_v47, %v1650_v47  ;;  %v770_v30 = vrot.slane %v1656_v49, 5 }
 0x477   :  { %v732_v40 = vpop.f32.mrf.mxu3  ;;  %v794_v53 = vmul.f32 %v1653_v35, %v1653_v35  ;;  %v795_v19 = vmul.f32 %v1656_v49, %v1656_v49  ;;  %v772_v54 = vrot.slane %v1659_v50, 4  ;;  %v774_v46 = vrot.slane %v1662_v52, 3 }
 0x478   :  { %v767_v21 = vsel %vm204_vm1, %v766_v51, %v1647_v34  ;;  %v796_v55 = vmul.f32 %v1659_v50, %v1659_v50  ;;  %v797_v56 = vmul.f32 %v1662_v52, %v1662_v52  ;;  %v808_v48 = vrot.slane %v793_v18, 7 }
 0x479   :  { %v769_v20 = vsel %vm207_vm2, %v768_v13, %v767_v21  ;;  %v810_v57 = vrot.slane %v794_v53, 6  ;;  %v776_v59 = vrot.slane %v1667_v14, 2  ;;  %v778_v60 = vrot.slane %v1670_v25, 1  ;;  %973 = vmatpush.bf16.msra.mxu2 %v1310_v42 }
 0x47a   :  { %v771_v36 = vsel %vm210_vm3, %v770_v30, %v769_v20  ;;  %v798_v61 = vmul.f32 %v1667_v14, %v1667_v14  ;;  %v799_v22 = vmul.f32 %v1670_v25, %v1670_v25  ;;  %v809_v0 = vsel %vm204_vm1, %v808_v48, %v792_v32 }
 0x47b   :  { %v773_v58 = vsel %vm213_vm4, %v772_v54, %v771_v36  ;;  %v812_v26 = vrot.slane %v795_v19, 5  ;;  %v811_v2 = vsel %vm207_vm2, %v810_v57, %v809_v0  ;;  %v814_v3 = vrot.slane %v796_v55, 4 }
 0x47c   :  { %v775_v62 = vsel %vm216_vm5, %v774_v46, %v773_v58  ;;  %v816_v7 = vrot.slane %v797_v56, 3  ;;  %v818_v10 = vrot.slane %v798_v61, 2  ;;  %v820_v11 = vrot.slane %v799_v22, 1 }
 0x47d   :  { %v777_v1 = vsel %vm219_vm6, %v776_v59, %v775_v62  ;;  %v813_v5 = vsel %vm210_vm3, %v812_v26, %v811_v2  ;;  %v1348_v59 = vld [vmem:[%s1889_s9 + $0x1] ss:$0 sm:$0xff] }
 0x47e   :  { %v779_v4 = vsel %vm222_vm7, %v778_v60, %v777_v1  ;;  %v815_v9 = vsel %vm213_vm4, %v814_v3, %v813_v5 }
 0x47f   :  { %v781_v8 = vsel %vm88_vm0, %v779_v4, 0.0  ;;  %v817_v63 = vsel %vm216_vm5, %v816_v7, %v815_v9 }
 0x480   :  { %782 = vadd.xlane.f32.xlu0 %v781_v8  ;;  %v819_v15 = vsel %vm219_vm6, %v818_v10, %v817_v63 }
 0x481   :  { %v821_v16 = vsel %vm222_vm7, %v820_v11, %v819_v15 }
 0x482   :  { %v823_v17 = vsel %vm88_vm0, %v821_v16, 0.0 }
 0x483   :  { %824 = vadd.xlane.f32.xlu2 %v823_v17 }
 0x4f3   :  { %v783_v6 = vpop.xlane.xlu0 %782 }
 0x4f4   :  { %v791_v29 = vmul.f32 %v1710_v12, %v783_v6 }
 0x4f6   :  { %v827_v38 = vmul.f32 %v791_v29, %v791_v29  ;;  %v825_v39 = vpop.xlane.xlu2 %824  ;;  %v831_v32 = vrot.slane %v791_v29, 1  ;;  %v832_v21 = vrot.slane %v791_v29, 2  ;;  %v833_v30 = vrot.slane %v791_v29, 3 }
 0x4f7   :  { %v826_v37 = vmul.f32 %v825_v39, %v1710_v12  ;;  %v834_v53 = vrot.slane %v791_v29, 4  ;;  %v835_v19 = vrot.slane %v791_v29, 5  ;;  %v836_v54 = vrot.slane %v791_v29, 6 }
 0x4f8   :  { %v837_v46 = vrot.slane %v791_v29, 7  ;;  %v846_v55 = vsub.f32 %v1647_v34, %v791_v29  ;;  %v847_v56 = vsub.f32 %v1650_v47, %v831_v32  ;;  %v848_v48 = vsub.f32 %v1653_v35, %v832_v21 }
 0x4f9   :  { %v828_v43 = vsub.f32 %v826_v37, %v827_v38  ;;  %v849_v57 = vsub.f32 %v1656_v49, %v833_v30  ;;  %v850_v58 = vsub.f32 %v1659_v50, %v834_v53  ;;  %v851_v61 = vsub.f32 %v1662_v52, %v835_v19  ;;  %v1349_v49 = vld [vmem:[%s1889_s9 + $0x2] ss:$0 sm:$0xff] }
 0x4fa   :  { %v852_v34 = vsub.f32 %v1667_v14, %v836_v54  ;;  %v853_v62 = vsub.f32 %v1670_v25, %v837_v46 }
 0x4fb   :  { %v829_v44 = vmax.f32 %v828_v43, 0.0 }
 0x4fd   :  { %v854_v41 = vadd.f32 1e-06, %v829_v44 }
 0x4ff   :  { %1374 = vrsqrt.f32 %v854_v41  ;;  %vm861_vm11 = vweird.f32 %v854_v41 }
 0x505   :  { %v1375_v51 = vpop.eup %1374 }
 0x506   :  { %v856_v13 = vmul.f32 %v1375_v51, %v854_v41  ;;  %vm862_vm10 = vweird.f32 %v1375_v51 }
 0x507   :  { %vm863_vm12 = vmor %vm861_vm11, %vm862_vm10 }
 0x508   :  { %v857_v40 = vmul.f32 %v1375_v51, %v856_v13 }
 0x50a   :  { %v858_v18 = vmul.f32 0.5, %v857_v40 }
 0x50c   :  { %v859_v20 = vsub.f32 1.5, %v858_v18 }
 0x50e   :  { %v860_v36 = vmul.f32 %v1375_v51, %v859_v20 }
 0x510   :  { %v864_v60 = vsel %vm863_vm12, %v1375_v51, %v860_v36 }
 0x511   :  { %v866_v22 = vrot.slane %v864_v60, 1  ;;  %v867_v47 = vrot.slane %v864_v60, 2  ;;  %v868_v0 = vrot.slane %v864_v60, 3  ;;  %v869_v35 = vrot.slane %v864_v60, 4 }
 0x512   :  { %v870_v50 = vrot.slane %v864_v60, 5  ;;  %v871_v26 = vrot.slane %v864_v60, 6  ;;  %v881_v1 = vmul.f32 %v864_v60, %v846_v55  ;;  %v872_v2 = vrot.slane %v864_v60, 7 }
 0x513   :  { %v882_v3 = vmul.f32 %v866_v22, %v847_v56  ;;  %v883_v4 = vmul.f32 %v867_v47, %v848_v48  ;;  %v884_v5 = vmul.f32 %v868_v0, %v849_v57  ;;  %v885_v52 = vmul.f32 %v869_v35, %v850_v58  ;;  %v1315_v22 = vld [vmem:[%s1892_s8 + $0x18] sm:$0xff]  ;;  %v1314_v47 = vld [vmem:[%s1892_s8 + $0x10] sm:$0xff]  ;;  %v1313_v0 = vld [vmem:[%s1892_s8 + $0x8] sm:$0xff] }
 0x514   :  { %v890_v7 = vmul.f32 %v1348_v59, %v881_v1  ;;  %v886_v14 = vmul.f32 %v870_v50, %v851_v61  ;;  %v887_v8 = vmul.f32 %v871_v26, %v852_v34  ;;  %v888_v25 = vmul.f32 %v872_v2, %v853_v62  ;;  %1030 = vmatpush.bf16.msra.mxu3 %v1315_v22  ;;  %v1312_v35 = vld [vmem:[%s1892_s8] sm:$0xff] }
 0x515   :  { %v891_v9 = vmul.f32 %v1348_v59, %v882_v3  ;;  %v892_v10 = vmul.f32 %v1348_v59, %v883_v4  ;;  %v893_v63 = vmul.f32 %v1348_v59, %v884_v5  ;;  %v894_v11 = vmul.f32 %v1348_v59, %v885_v52 }
 0x516   :  { %v1734_v15 = vadd.f32 %v1349_v49, %v890_v7  ;;  %v895_v16 = vmul.f32 %v1348_v59, %v886_v14  ;;  %v896_v17 = vmul.f32 %v1348_v59, %v887_v8  ;;  %v897_v23 = vmul.f32 %v1348_v59, %v888_v25 }
 0x517   :  { %v1736_v45 = vadd.f32 %v1349_v49, %v891_v9  ;;  %v1738_v27 = vadd.f32 %v1349_v49, %v892_v10  ;;  %v1740_v28 = vadd.f32 %v1349_v49, %v893_v63  ;;  %v1742_v31 = vadd.f32 %v1349_v49, %v894_v11  ;;  %v1353_v10 = vld [vmem:[%s1889_s9 + $0x4] ss:$0 sm:$0xff] }
 0x518   :  { %v1744_v33 = vadd.f32 %v1349_v49, %v895_v16  ;;  %v1746_v6 = vadd.f32 %v1349_v49, %v896_v17  ;;  %v1748_v29 = vadd.f32 %v1349_v49, %v897_v23  ;;  %v907_v38 = vpack.c.bf16 %v1734_v15, %v1734_v15  ;;  %1031 = vmatpush.bf16.msra.mxu3 %v1314_v47  ;;  %v1352_v49 = vld [vmem:[%s1889_s9 + $0x3] ss:$0 sm:$0xff] }
 0x519   :  { %v908_v39 = vpack.c.bf16 %v1736_v45, %v1736_v45  ;;  %v909_v24 = vpack.c.bf16 %v1738_v27, %v1738_v27  ;;  %v910_v37 = vpack.c.bf16 %v1740_v28, %v1740_v28  ;;  %v911_v42 = vpack.c.bf16 %v1742_v31, %v1742_v31 }
 0x51a   :  { %v912_v43 = vpack.c.bf16 %v1744_v33, %v1744_v33  ;;  %v913_v44 = vpack.c.bf16 %v1746_v6, %v1746_v6  ;;  %v914_v41 = vpack.c.bf16 %v1748_v29, %v1748_v29  ;;  %v928_v18 = vunpack.c.l.b16 %v907_v38 }
 0x51b   :  { %v929_v51 = vunpack.c.l.b16 %v908_v39  ;;  %v930_v13 = vunpack.c.l.b16 %v909_v24  ;;  %v931_v40 = vunpack.c.l.b16 %v910_v37  ;;  %v932_v32 = vunpack.c.l.b16 %v911_v42 }
 0x51c   :  { %v933_v21 = vunpack.c.l.b16 %v912_v43  ;;  %v934_v19 = vunpack.c.l.b16 %v913_v44  ;;  %v935_v20 = vunpack.c.l.b16 %v914_v41  ;;  %1032 = vmatpush.bf16.msra.mxu3 %v1313_v0 }
 0x51d   :  { %v936_v30 = vrot.slane %v929_v51, 7  ;;  %v938_v53 = vrot.slane %v930_v13, 6  ;;  %v940_v46 = vrot.slane %v931_v40, 5  ;;  %v942_v36 = vrot.slane %v932_v32, 4 }
 0x51e   :  { %v944_v48 = vrot.slane %v933_v21, 3  ;;  %v946_v58 = vrot.slane %v934_v19, 2  ;;  %v948_v60 = vrot.slane %v935_v20, 1 }
 0x51f   :  { %v937_v54 = vsel %vm204_vm1, %v936_v30, %v928_v18 }
 0x520   :  { %v939_v55 = vsel %vm207_vm2, %v938_v53, %v937_v54  ;;  %1033 = vmatpush.bf16.msra.mxu3 %v1312_v35 }
 0x521   :  { %v941_v56 = vsel %vm210_vm3, %v940_v46, %v939_v55 }
 0x522   :  { %v943_v57 = vsel %vm213_vm4, %v942_v36, %v941_v56 }
 0x523   :  { %v945_v59 = vsel %vm216_vm5, %v944_v48, %v943_v57 }
 0x524   :  { %v947_v61 = vsel %vm219_vm6, %v946_v58, %v945_v59 }
 0x525   :  { %v949_v34 = vsel %vm222_vm7, %v948_v60, %v947_v61 }
 0x526   :  { %v950_v62 = vpack.c.b16 %v949_v34, %v949_v34 }
 0x528   :  { %1284 = vmatmul.msk.bf16.vlgmr.msra.gmra.mxu2 %vm88_vm0, %v950_v62 }
 0x5ab   :  { %v975_v50 = vpop.f32.mrf.mxu2 }
 0x5ac   :  { %v976_v26 = vadd.f32 %v1352_v49, %v975_v50 }
 0x5ae   :  { %v979_v1 = vmul.f32 %v976_v26, %v976_v26 }
 0x5b0   :  { %v980_v2 = vmul.f32 %v979_v1, %v976_v26 }
 0x5b2   :  { %v981_v3 = vmul.f32 0.044715, %v980_v2 }
 0x5b3   :  { %v977_v4 = vpop.f32.mrf.mxu2 }
 0x5b4   :  { %v982_v5 = vadd.f32 %v981_v3, %v976_v26 }
 0x5b6   :  { %v983_v52 = vmul.f32 0.7978846, %v982_v5 }
 0x5b8   :  { %1376 = vtanh.f32 %v983_v52 }
 0x5be   :  { %v1377_v7 = vpop.eup %1376 }
 0x5bf   :  { %v985_v14 = vadd.f32 1.0, %v1377_v7 }
 0x5c1   :  { %v986_v8 = vmul.f32 0.5, %v985_v14 }
 0x5c3   :  { %v987_v25 = vmul.f32 %v986_v8, %v976_v26 }
 0x5c5   :  { %v988_v9 = vpack.c.bf16 %v987_v25, %v987_v25 }
 0x5c7   :  { %1301 = vmatmul.msk.bf16.vlgmr.msra.gmra.mxu3 %vm1022_vm13, %v988_v9 }
 0x64a   :  { %v1035_v63 = vpop.f32.mrf.mxu3 }
 0x64b   :  { %v1036_v11 = vadd.f32 %v1353_v10, %v1035_v63 }
 0x64d   :  { %v1040_v16 = vrot.slane %v1036_v11, 1  ;;  %v1041_v17 = vrot.slane %v1036_v11, 2  ;;  %v1042_v23 = vrot.slane %v1036_v11, 3  ;;  %v1043_v38 = vrot.slane %v1036_v11, 4 }
 0x64e   :  { %v1044_v39 = vrot.slane %v1036_v11, 5  ;;  %v1045_v24 = vrot.slane %v1036_v11, 6  ;;  %v1046_v37 = vrot.slane %v1036_v11, 7  ;;  %v1793_v42 = vadd.f32 %v1036_v11, %v1734_v15 }
 0x64f   :  { %v1796_v43 = vadd.f32 %v1040_v16, %v1736_v45  ;;  %v1799_v44 = vadd.f32 %v1041_v17, %v1738_v27  ;;  %v1802_v41 = vadd.f32 %v1042_v23, %v1740_v28  ;;  %v1805_v51 = vadd.f32 %v1043_v38, %v1742_v31 }
 0x650   :  { %v1808_v13 = vadd.f32 %v1044_v39, %v1744_v33  ;;  %v1813_v45 = vadd.f32 %v1045_v24, %v1746_v6  ;;  %v1816_v27 = vadd.f32 %v1046_v37, %v1748_v29  ;;  %v1090_v28 = vmul.f32 %v1793_v42, %v1793_v42 }
 0x651   :  { %v1071_v40 = vrot.slane %v1796_v43, 7  ;;  %v1073_v15 = vrot.slane %v1799_v44, 6  ;;  %v1091_v31 = vmul.f32 %v1796_v43, %v1796_v43  ;;  %v1075_v18 = vrot.slane %v1802_v41, 5 }
 0x652   :  { %v1037_v32 = vpop.f32.mrf.mxu3  ;;  %v1092_v21 = vmul.f32 %v1799_v44, %v1799_v44  ;;  %v1093_v6 = vmul.f32 %v1802_v41, %v1802_v41  ;;  %v1077_v30 = vrot.slane %v1805_v51, 4  ;;  %v1079_v53 = vrot.slane %v1808_v13, 3 }
 0x653   :  { %v1072_v33 = vsel %vm204_vm1, %v1071_v40, %v1793_v42  ;;  %v1094_v19 = vmul.f32 %v1805_v51, %v1805_v51  ;;  %v1095_v54 = vmul.f32 %v1808_v13, %v1808_v13  ;;  %v1106_v46 = vrot.slane %v1091_v31, 7 }
 0x654   :  { %v1074_v29 = vsel %vm207_vm2, %v1073_v15, %v1072_v33  ;;  %v1108_v55 = vrot.slane %v1092_v21, 6  ;;  %v1081_v56 = vrot.slane %v1813_v45, 2  ;;  %v1083_v48 = vrot.slane %v1816_v27, 1 }
 0x655   :  { %v1076_v20 = vsel %vm210_vm3, %v1075_v18, %v1074_v29  ;;  %v1096_v57 = vmul.f32 %v1813_v45, %v1813_v45  ;;  %v1097_v59 = vmul.f32 %v1816_v27, %v1816_v27  ;;  %v1107_v60 = vsel %vm204_vm1, %v1106_v46, %v1090_v28  ;;  %v1350_v29 = vld [vmem:[%s1889_s9 + $0x5] ss:$0 sm:$0xff] }
 0x656   :  { %v1078_v36 = vsel %vm213_vm4, %v1077_v30, %v1076_v20  ;;  %v1110_v61 = vrot.slane %v1093_v6, 5  ;;  %v1109_v62 = vsel %vm207_vm2, %v1108_v55, %v1107_v60  ;;  %v1112_v22 = vrot.slane %v1094_v19, 4 }
 0x657   :  { %v1080_v58 = vsel %vm216_vm5, %v1079_v53, %v1078_v36  ;;  %v1114_v35 = vrot.slane %v1095_v54, 3  ;;  %v1116_v26 = vrot.slane %v1096_v57, 2  ;;  %v1118_v2 = vrot.slane %v1097_v59, 1 }
 0x658   :  { %v1082_v34 = vsel %vm219_vm6, %v1081_v56, %v1080_v58  ;;  %v1111_v0 = vsel %vm210_vm3, %v1110_v61, %v1109_v62 }
 0x659   :  { %v1084_v47 = vsel %vm222_vm7, %v1083_v48, %v1082_v34  ;;  %v1113_v50 = vsel %vm213_vm4, %v1112_v22, %v1111_v0 }
 0x65a   :  { %v1086_v49 = vsel %vm88_vm0, %v1084_v47, 0.0  ;;  %v1115_v1 = vsel %vm216_vm5, %v1114_v35, %v1113_v50 }
 0x65b   :  { %1087 = vadd.xlane.f32.xlu1 %v1086_v49  ;;  %v1117_v3 = vsel %vm219_vm6, %v1116_v26, %v1115_v1 }
 0x65c   :  { %v1119_v4 = vsel %vm222_vm7, %v1118_v2, %v1117_v3 }
 0x65d   :  { %v1121_v5 = vsel %vm88_vm0, %v1119_v4, 0.0 }
 0x65e   :  { %1122 = vadd.xlane.f32.xlu2 %v1121_v5 }
 0x6ce   :  { %v1088_v52 = vpop.xlane.xlu1 %1087 }
 0x6cf   :  { %v1089_v7 = vmul.f32 %v1088_v52, %v1710_v12 }
 0x6d1   :  { %v1125_v14 = vmul.f32 %v1089_v7, %v1089_v7  ;;  %v1123_v8 = vpop.xlane.xlu2 %1122  ;;  %v1129_v23 = vrot.slane %v1089_v7, 1  ;;  %v1130_v39 = vrot.slane %v1089_v7, 2  ;;  %v1131_v24 = vrot.slane %v1089_v7, 3 }
 0x6d2   :  { %v1124_v25 = vmul.f32 %v1123_v8, %v1710_v12  ;;  %v1132_v37 = vrot.slane %v1089_v7, 4  ;;  %v1133_v40 = vrot.slane %v1089_v7, 5  ;;  %v1134_v15 = vrot.slane %v1089_v7, 6 }
 0x6d3   :  { %v1135_v32 = vrot.slane %v1089_v7, 7  ;;  %v1144_v31 = vsub.f32 %v1793_v42, %v1089_v7  ;;  %v1145_v33 = vsub.f32 %v1796_v43, %v1129_v23  ;;  %v1146_v18 = vsub.f32 %v1799_v44, %v1130_v39 }
 0x6d4   :  { %v1126_v9 = vsub.f32 %v1124_v25, %v1125_v14  ;;  %v1147_v21 = vsub.f32 %v1802_v41, %v1131_v24  ;;  %v1148_v6 = vsub.f32 %v1805_v51, %v1132_v37  ;;  %v1149_v30 = vsub.f32 %v1808_v13, %v1133_v40 }
 0x6d5   :  { %v1150_v53 = vsub.f32 %v1813_v45, %v1134_v15  ;;  %v1151_v42 = vsub.f32 %v1816_v27, %v1135_v32  ;;  %v1351_v45 = vld [vmem:[%s1889_s9 + $0x6] ss:$0 sm:$0xff] }
 0x6d6   :  { %v1127_v10 = vmax.f32 %v1126_v9, 0.0 }
 0x6d8   :  { %v1152_v63 = vadd.f32 1e-06, %v1127_v10 }
 0x6da   :  { %1378 = vrsqrt.f32 %v1152_v63  ;;  %vm1159_vm15 = vweird.f32 %v1152_v63 }
 0x6e0   :  { %v1379_v11 = vpop.eup %1378 }
 0x6e1   :  { %v1154_v16 = vmul.f32 %v1379_v11, %v1152_v63  ;;  %vm1160_vm14 = vweird.f32 %v1379_v11 }
 0x6e2   :  { %vm1161_vm8 = vmor %vm1159_vm15, %vm1160_vm14 }
 0x6e3   :  { %v1155_v17 = vmul.f32 %v1379_v11, %v1154_v16 }
 0x6e5   :  { %v1156_v38 = vmul.f32 0.5, %v1155_v17 }
 0x6e7   :  { %v1157_v28 = vsub.f32 1.5, %v1156_v38 }
 0x6e9   :  { %v1158_v12 = vmul.f32 %v1379_v11, %v1157_v28 }
 0x6eb   :  { %v1162_v19 = vsel %vm1161_vm8, %v1379_v11, %v1158_v12 }
 0x6ec   :  { %v1164_v20 = vrot.slane %v1162_v19, 1  ;;  %v1165_v43 = vrot.slane %v1162_v19, 2  ;;  %v1166_v54 = vrot.slane %v1162_v19, 3  ;;  %v1167_v44 = vrot.slane %v1162_v19, 4 }
 0x6ed   :  { %v1168_v46 = vrot.slane %v1162_v19, 5  ;;  %v1169_v41 = vrot.slane %v1162_v19, 6  ;;  %v1170_v55 = vrot.slane %v1162_v19, 7  ;;  %v1179_v51 = vmul.f32 %v1162_v19, %v1144_v31 }
 0x6ee   :  { %v1180_v36 = vmul.f32 %v1164_v20, %v1145_v33  ;;  %v1181_v56 = vmul.f32 %v1165_v43, %v1146_v18  ;;  %v1182_v48 = vmul.f32 %v1166_v54, %v1147_v21  ;;  %v1183_v57 = vmul.f32 %v1167_v44, %v1148_v6 }
 0x6ef   :  { %v1184_v58 = vmul.f32 %v1168_v46, %v1149_v30  ;;  %v1185_v59 = vmul.f32 %v1169_v41, %v1150_v53  ;;  %v1186_v13 = vmul.f32 %v1170_v55, %v1151_v42  ;;  %v1188_v60 = vmul.f32 %v1350_v29, %v1179_v51 }
 0x6f0   :  { %v1189_v27 = vmul.f32 %v1350_v29, %v1180_v36  ;;  %v1190_v61 = vmul.f32 %v1350_v29, %v1181_v56  ;;  %v1191_v34 = vmul.f32 %v1350_v29, %v1182_v48  ;;  %v1192_v62 = vmul.f32 %v1350_v29, %v1183_v57 }
 0x6f1   :  { %v1193_v22 = vmul.f32 %v1350_v29, %v1184_v58  ;;  %v1194_v47 = vmul.f32 %v1350_v29, %v1185_v59  ;;  %v1195_v0 = vmul.f32 %v1350_v29, %v1186_v13  ;;  %v1197_v1 = vadd.f32 %v1351_v45, %v1188_v60 }
 0x6f2   :  { %v1198_v35 = vadd.f32 %v1351_v45, %v1189_v27  ;;  %v1199_v49 = vadd.f32 %v1351_v45, %v1190_v61  ;;  %v1200_v50 = vadd.f32 %v1351_v45, %v1191_v34  ;;  %v1201_v26 = vadd.f32 %v1351_v45, %v1192_v62 }
 0x6f3   :  { %v1202_v2 = vadd.f32 %v1351_v45, %v1193_v22  ;;  %v1203_v5 = vadd.f32 %v1351_v45, %v1194_v47  ;;  %v1204_v52 = vadd.f32 %v1351_v45, %v1195_v0 }
 0x6f4   :  { %v1213_v3 = vrot.slane %v1198_v35, 7  ;;  %v1215_v4 = vrot.slane %v1199_v49, 6  ;;  %v1217_v14 = vrot.slane %v1200_v50, 5  ;;  %v1219_v25 = vrot.slane %v1201_v26, 4 }
 0x6f5   :  { %v1221_v10 = vrot.slane %v1202_v2, 3  ;;  %v1223_v11 = vrot.slane %v1203_v5, 2  ;;  %v1225_v17 = vrot.slane %v1204_v52, 1 }
 0x6f6   :  { %v1214_v7 = vsel %vm204_vm1, %v1213_v3, %v1197_v1 }
 0x6f7   :  { %v1216_v8 = vsel %vm207_vm2, %v1215_v4, %v1214_v7 }
 0x6f8   :  { %v1218_v9 = vsel %vm210_vm3, %v1217_v14, %v1216_v8 }
 0x6f9   :  { %v1220_v63 = vsel %vm213_vm4, %v1219_v25, %v1218_v9 }
 0x6fa   :  { %v1222_v16 = vsel %vm216_vm5, %v1221_v10, %v1220_v63 }
 0x6fb   :  { %v1224_v23 = vsel %vm219_vm6, %v1223_v11, %v1222_v16 }
 0x6fc   :  { %v1226_v38 = vsel %vm222_vm7, %v1225_v17, %v1224_v23 }
 0x6fd   :  { %1228 = vst.msk [vmem:[%s1893_s10] sm:$0xff] %vm88_vm0, %v1226_v38 }

</bundles_post_ra>
